<compile_context>
chip_gen: v7x
topology: tpu7x:2x2x1
jax: 0.10.0
libtpu: 0.0.40
codegen_flags: <defaults>
</compile_context>

<pallas_src>
import jax
import jax.numpy as jnp
from jax.experimental import pallas as pl

# ---- static problem sizes (consistent with the module) ----------------------
B = 2
T = 30                      # sequence length fed to channel_transform
D_IN = 16                   # input_size
D_OUT = 8                   # output_size
L1 = (T - 9) // 2 + 1       # 11  (Conv1d k=9, stride=2, valid)
L2 = L1 - 4                 # 7   (Conv1d k=5, stride=1, valid)
L3 = L2 - 4                 # 3   (Conv1d k=5, stride=1, valid)
HALF = T // 2               # 15  even (and odd) time steps per element
EVN = HALF + 1              # 16  rows per even/odd block (padded, mult. of 8)
OFF = 2 * EVN               # 32  per-batch-element row offset
OD = EVN                    # 16  odd-block offset inside an element

assert T % 2 == 0
assert L3 == 3, "flatten(1) @ Linear(32*3, out) requires final conv length == 3"
assert L1 + 4 <= EVN        # conv1 taps never read a neighbouring element

# ---- packed-weight row offsets (every start is a multiple of 8) --------------
R_W1, N_W1 = 0, D_IN          # channel Linear 1            (16, 32)
R_W2, N_W2 = 16, 32           # channel Linear 2            (32, 32)
R_CW1, N_CW1 = 48, 9 * 32     # conv1 im2col weight         (288, 32)
R_CW2, N_CW2 = 336, 5 * 32    # conv2 im2col weight         (160, 32)
R_CW3, N_CW3 = 496, 5 * 32    # conv3 im2col weight         (160, 32)
R_WP, N_WP = 656, L3 * 32     # proj weight (lane-padded)   (96, 32)
R_B1, R_B2, R_CB1, R_CB2, R_CB3, R_BP = 752, 760, 768, 776, 784, 792
N_WROWS = 800


def proprio_adapt_kernel(x_ref, w_ref, o_ref):
    f32 = jnp.float32

    def w(r, n):                                   # static, 8-aligned slab load
        return w_ref[pl.ds(r, n), :]

    def bias(r):                                   # (1, 32) bias row
        return w_ref[pl.ds(r, 1), :]

    # ---- channel_transform: Linear -> ReLU -> Linear -> ReLU (all rows) -----
    h = jnp.dot(x_ref[...], w(R_W1, N_W1), preferred_element_type=f32) + bias(R_B1)
    h = jnp.maximum(h, 0.0)
    h = jnp.dot(h, w(R_W2, N_W2), preferred_element_type=f32) + bias(R_B2)
    h = jnp.maximum(h, 0.0)                        # (B*OFF, 32)
    # element b: even time steps at rows OFF*b + [0, HALF),
    #            odd  time steps at rows OFF*b + OD + [0, HALF)

    # ---- conv1 (k=9, stride=2): ONE matmul via lane-axis im2col -------------
    r1 = OFF * (B - 1) + L1                        # 43 stacked rows
    c1 = jnp.concatenate(
        [h[m:m + r1, :] for m in range(5)]                 # even taps k = 2m
        + [h[OD + m:OD + m + r1, :] for m in range(4)],    # odd taps  k = 2m+1
        axis=1)                                    # (r1, 288)
    h1 = jnp.maximum(
        jnp.dot(c1, w(R_CW1, N_CW1), preferred_element_type=f32) + bias(R_CB1),
        0.0)                                       # elem b valid at OFF*b + [0, L1)

    # ---- conv2 (k=5, stride=1) ------------------------------------------------
    r2 = OFF * (B - 1) + L2                        # 39
    c2 = jnp.concatenate([h1[k:k + r2, :] for k in range(5)], axis=1)   # (r2, 160)
    h2 = jnp.maximum(
        jnp.dot(c2, w(R_CW2, N_CW2), preferred_element_type=f32) + bias(R_CB2),
        0.0)                                       # elem b valid at OFF*b + [0, L2)

    # ---- conv3 (k=5, stride=1) ------------------------------------------------
    r3 = OFF * (B - 1) + L3                        # 35
    c3 = jnp.concatenate([h2[k:k + r3, :] for k in range(5)], axis=1)   # (r3, 160)
    h3 = jnp.maximum(
        jnp.dot(c3, w(R_CW3, N_CW3), preferred_element_type=f32) + bias(R_CB3),
        0.0)                                       # elem b valid at OFF*b + [0, L3)

    # ---- low_dim_proj: gather the B needed rows, one (B, 96) @ (96, 32) ------
    c4 = jnp.concatenate(
        [jnp.concatenate([h3[OFF * bb + l:OFF * bb + l + 1, :] for l in range(L3)],
                         axis=1)
         for bb in range(B)],
        axis=0)                                    # (B, 96)
    out = jnp.dot(c4, w(R_WP, N_WP), preferred_element_type=f32) + bias(R_BP)
    o_ref[...] = out[:, :D_OUT]                    # single (B, D_OUT) store


def prepare_params(params):
    """One-time conversion of the 12 module parameters into a single packed
    (N_WROWS, 32) float32 buffer with the layout the kernel expects."""
    (w1, b1, w2, b2, cw1, cb1, cw2, cb2, cw3, cb3, wp, bp) = params

    def pad_lanes(a):
        return jnp.pad(a, ((0, 0), (0, 32 - a.shape[1])))

    # conv1 im2col weight: even taps (k=0,2,4,6,8) then odd taps (k=1,3,5,7),
    # each tap contributing 32 rows (its input channels).
    cw1p = jnp.concatenate([cw1[0::2].reshape(5 * 32, 32),
                            cw1[1::2].reshape(4 * 32, 32)], axis=0)        # (288, 32)
    cw2p = cw2.reshape(5 * 32, 32)
    cw3p = cw3.reshape(5 * 32, 32)
    # Fold PyTorch's channel-major flatten(1): packed row (32*l + c) = wp[c*L3 + l]
    wpp = pad_lanes(
        wp.reshape(32, L3, D_OUT).transpose(1, 0, 2).reshape(L3 * 32, D_OUT))

    packed = jnp.zeros((N_WROWS, 32), jnp.float32)
    for r, a in ((R_W1, w1), (R_W2, w2), (R_CW1, cw1p), (R_CW2, cw2p),
                 (R_CW3, cw3p), (R_WP, wpp),
                 (R_B1, b1.reshape(1, 32)), (R_B2, b2.reshape(1, 32)),
                 (R_CB1, cb1.reshape(1, 32)), (R_CB2, cb2.reshape(1, 32)),
                 (R_CB3, cb3.reshape(1, 32)),
                 (R_BP, pad_lanes(bp.reshape(1, D_OUT)))):
        packed = packed.at[r:r + a.shape[0], :].set(a)
    return packed


def proprio_adapt_tconv(x, packed_w):
    assert x.shape == (B, T, D_IN)
    # Wrapper-side re-layout (free plumbing): per batch element the rows are
    # [even 15 | pad | odd 15 | pad] so every in-kernel slice is contiguous.
    pad = jnp.zeros((B, 1, D_IN), x.dtype)
    x_re = jnp.concatenate([x[:, 0::2, :], pad, x[:, 1::2, :], pad], axis=1)
    x_re = x_re.reshape(B * OFF, D_IN)             # (64, 16), element b at OFF*b

    def full_spec(shape):
        nd = len(shape)
        return pl.BlockSpec(shape, lambda i, _nd=nd: (0,) * _nd)

    # Single fused grid step; total footprint << 1 MiB so no tiling is needed.
    return pl.pallas_call(
        proprio_adapt_kernel,
        out_shape=jax.ShapeDtypeStruct((B, D_OUT), jnp.float32),
        grid=(1,),
        in_specs=[full_spec((B * OFF, D_IN)), full_spec((N_WROWS, 32))],
        out_specs=pl.BlockSpec((B, D_OUT), lambda i: (0, 0)),
    )(x_re, packed_w)


# ---- pure-JAX reference (mirrors the PyTorch forward exactly) ----------------
def ref_forward(x, params):
    (w1, b1, w2, b2, cw1, cb1, cw2, cb2, cw3, cb3, wp, bp) = params
    h = jax.nn.relu(x @ w1 + b1)
    h = jax.nn.relu(h @ w2 + b2)                                 # (B, T, 32)
    h = jnp.transpose(h, (0, 2, 1))                              # (B, 32, T)

    def conv1d_relu(h_ncl, cw_kio, cb, stride):
        w_oih = jnp.transpose(cw_kio, (2, 1, 0))                 # (Cout, Cin, K)
        out = jax.lax.conv_general_dilated(
            h_ncl, w_oih, window_strides=(stride,), padding="VALID",
            dimension_numbers=("NCH", "OIH", "NCH"))
        return jax.nn.relu(out + cb.reshape(1, -1, 1))

    h = conv1d_relu(h, cw1, cb1, 2)
    h = conv1d_relu(h, cw2, cb2, 1)
    h = conv1d_relu(h, cw3, cb3, 1)                              # (B, 32, 3)
    flat = h.reshape(h.shape[0], -1)                             # channel-major
    return flat @ wp + bp


if __name__ == "__main__":
    key = jax.random.PRNGKey(0)
    keys = jax.random.split(key, 13)

    def init(k, shape, scale=0.1):
        return scale * jax.random.normal(k, shape, jnp.float32)

    params = (
        init(keys[0], (D_IN, 32)),        # channel_transform Linear 1 (in, out)
        init(keys[1], (32,)),
        init(keys[2], (32, 32)),          # channel_transform Linear 2
        init(keys[3], (32,)),
        init(keys[4], (9, 32, 32)),       # Conv1d k=9 s=2, stored (K, Cin, Cout)
        init(keys[5], (32,)),
        init(keys[6], (5, 32, 32)),       # Conv1d k=5 s=1
        init(keys[7], (32,)),
        init(keys[8], (5, 32, 32)),       # Conv1d k=5 s=1
        init(keys[9], (32,)),
        init(keys[10], (32 * 3, D_OUT)),  # low_dim_proj (in, out), channel-major rows
        init(keys[11], (D_OUT,)),
    )
    x = jax.random.normal(keys[12], (B, T, D_IN), jnp.float32)

    packed_w = prepare_params(params)     # one-time weight re-layout / packing
    fwd = jax.jit(proprio_adapt_tconv)
    out = jax.block_until_ready(fwd(x, packed_w))

    ref = ref_forward(x, params)
    assert out.shape == (B, D_OUT)
    assert jnp.allclose(out, ref, atol=1e-4, rtol=1e-3), (out, ref)
    print("KERNEL_OK")
</pallas_src>

<mosaic_0001>
module attributes {stable_mosaic.version = 11 : i64} {
  func.func @proprio_adapt_kernel(%arg0: i32, %arg1: memref<64x16xf32, #tpu.memory_space<vmem>>, %arg2: memref<800x32xf32, #tpu.memory_space<vmem>>, %arg3: memref<2x8xf32, #tpu.memory_space<vmem>>) attributes {dimension_semantics = [#tpu.dimension_semantics<arbitrary>], iteration_bounds = array<i64: 1>, scalar_prefetch = 0 : i64, scratch_operands = 0 : i64, tpu.core_type = #tpu.core_type<tc>, window_params = [{pipeline_mode = #tpu.pipeline_mode<synchronous>, transform_indices = @transform_0, window_bounds = array<i64: 64, 16>}, {pipeline_mode = #tpu.pipeline_mode<synchronous>, transform_indices = @transform_1, window_bounds = array<i64: 800, 32>}, {pipeline_mode = #tpu.pipeline_mode<synchronous>, transform_indices = @transform_2, window_bounds = array<i64: 2, 8>}]} {
    %c0 = arith.constant 0 : index
    %c0_0 = arith.constant 0 : index
    %0 = vector.load %arg1[%c0, %c0_0] : memref<64x16xf32, #tpu.memory_space<vmem>>, vector<64x16xf32>
    %c0_1 = arith.constant 0 : index
    %c0_2 = arith.constant 0 : index
    %1 = vector.load %arg2[%c0_1, %c0_2] : memref<800x32xf32, #tpu.memory_space<vmem>>, vector<16x32xf32>
    %cst = arith.constant dense<0.000000e+00> : vector<64x32xf32>
    %2 = tpu.matmul %0, %1, %cst {dimension_numbers = #tpu.dot_dimension_numbers<[1], [0], [0], [1], [0, 0, 1, 1], [], []>} : vector<64x16xf32>, vector<16x32xf32>, vector<64x32xf32> -> vector<64x32xf32>
    %c752 = arith.constant 752 : index
    %c0_3 = arith.constant 0 : index
    %3 = vector.load %arg2[%c752, %c0_3] : memref<800x32xf32, #tpu.memory_space<vmem>>, vector<1x32xf32>
    %4 = vector.broadcast %3 : vector<1x32xf32> to vector<64x32xf32>
    %5 = arith.addf %2, %4 : vector<64x32xf32>
    %cst_4 = arith.constant 0.000000e+00 : f32
    %6 = vector.broadcast %cst_4 : f32 to vector<64x32xf32>
    %7 = arith.maximumf %5, %6 : vector<64x32xf32>
    %c16 = arith.constant 16 : index
    %c0_5 = arith.constant 0 : index
    %8 = vector.load %arg2[%c16, %c0_5] : memref<800x32xf32, #tpu.memory_space<vmem>>, vector<32x32xf32>
    %cst_6 = arith.constant dense<0.000000e+00> : vector<64x32xf32>
    %9 = tpu.matmul %7, %8, %cst_6 {dimension_numbers = #tpu.dot_dimension_numbers<[1], [0], [0], [1], [0, 0, 1, 1], [], []>} : vector<64x32xf32>, vector<32x32xf32>, vector<64x32xf32> -> vector<64x32xf32>
    %c760 = arith.constant 760 : index
    %c0_7 = arith.constant 0 : index
    %10 = vector.load %arg2[%c760, %c0_7] : memref<800x32xf32, #tpu.memory_space<vmem>>, vector<1x32xf32>
    %11 = vector.broadcast %10 : vector<1x32xf32> to vector<64x32xf32>
    %12 = arith.addf %9, %11 : vector<64x32xf32>
    %cst_8 = arith.constant 0.000000e+00 : f32
    %13 = vector.broadcast %cst_8 : f32 to vector<64x32xf32>
    %14 = arith.maximumf %12, %13 : vector<64x32xf32>
    %15 = vector.extract_strided_slice %14 {offsets = [0, 0], sizes = [43, 32], strides = [1, 1]} : vector<64x32xf32> to vector<43x32xf32>
    %16 = vector.extract_strided_slice %14 {offsets = [1, 0], sizes = [43, 32], strides = [1, 1]} : vector<64x32xf32> to vector<43x32xf32>
    %17 = vector.extract_strided_slice %14 {offsets = [2, 0], sizes = [43, 32], strides = [1, 1]} : vector<64x32xf32> to vector<43x32xf32>
    %18 = vector.extract_strided_slice %14 {offsets = [3, 0], sizes = [43, 32], strides = [1, 1]} : vector<64x32xf32> to vector<43x32xf32>
    %19 = vector.extract_strided_slice %14 {offsets = [4, 0], sizes = [43, 32], strides = [1, 1]} : vector<64x32xf32> to vector<43x32xf32>
    %20 = vector.extract_strided_slice %14 {offsets = [16, 0], sizes = [43, 32], strides = [1, 1]} : vector<64x32xf32> to vector<43x32xf32>
    %21 = vector.extract_strided_slice %14 {offsets = [17, 0], sizes = [43, 32], strides = [1, 1]} : vector<64x32xf32> to vector<43x32xf32>
    %22 = vector.extract_strided_slice %14 {offsets = [18, 0], sizes = [43, 32], strides = [1, 1]} : vector<64x32xf32> to vector<43x32xf32>
    %23 = vector.extract_strided_slice %14 {offsets = [19, 0], sizes = [43, 32], strides = [1, 1]} : vector<64x32xf32> to vector<43x32xf32>
    %24 = tpu.concatenate %15, %16, %17, %18, %19, %20, %21, %22, %23 in 1 : vector<43x32xf32>, vector<43x32xf32>, vector<43x32xf32>, vector<43x32xf32>, vector<43x32xf32>, vector<43x32xf32>, vector<43x32xf32>, vector<43x32xf32>, vector<43x32xf32> -> vector<43x288xf32>
    %c48 = arith.constant 48 : index
    %c0_9 = arith.constant 0 : index
    %25 = vector.load %arg2[%c48, %c0_9] : memref<800x32xf32, #tpu.memory_space<vmem>>, vector<288x32xf32>
    %cst_10 = arith.constant dense<0.000000e+00> : vector<43x32xf32>
    %26 = tpu.matmul %24, %25, %cst_10 {dimension_numbers = #tpu.dot_dimension_numbers<[1], [0], [0], [1], [0, 0, 1, 1], [], []>} : vector<43x288xf32>, vector<288x32xf32>, vector<43x32xf32> -> vector<43x32xf32>
    %c768 = arith.constant 768 : index
    %c0_11 = arith.constant 0 : index
    %27 = vector.load %arg2[%c768, %c0_11] : memref<800x32xf32, #tpu.memory_space<vmem>>, vector<1x32xf32>
    %28 = vector.broadcast %27 : vector<1x32xf32> to vector<43x32xf32>
    %29 = arith.addf %26, %28 : vector<43x32xf32>
    %cst_12 = arith.constant 0.000000e+00 : f32
    %30 = vector.broadcast %cst_12 : f32 to vector<43x32xf32>
    %31 = arith.maximumf %29, %30 : vector<43x32xf32>
    %32 = vector.extract_strided_slice %31 {offsets = [0, 0], sizes = [39, 32], strides = [1, 1]} : vector<43x32xf32> to vector<39x32xf32>
    %33 = vector.extract_strided_slice %31 {offsets = [1, 0], sizes = [39, 32], strides = [1, 1]} : vector<43x32xf32> to vector<39x32xf32>
    %34 = vector.extract_strided_slice %31 {offsets = [2, 0], sizes = [39, 32], strides = [1, 1]} : vector<43x32xf32> to vector<39x32xf32>
    %35 = vector.extract_strided_slice %31 {offsets = [3, 0], sizes = [39, 32], strides = [1, 1]} : vector<43x32xf32> to vector<39x32xf32>
    %36 = vector.extract_strided_slice %31 {offsets = [4, 0], sizes = [39, 32], strides = [1, 1]} : vector<43x32xf32> to vector<39x32xf32>
    %37 = tpu.concatenate %32, %33, %34, %35, %36 in 1 : vector<39x32xf32>, vector<39x32xf32>, vector<39x32xf32>, vector<39x32xf32>, vector<39x32xf32> -> vector<39x160xf32>
    %c336 = arith.constant 336 : index
    %c0_13 = arith.constant 0 : index
    %38 = vector.load %arg2[%c336, %c0_13] : memref<800x32xf32, #tpu.memory_space<vmem>>, vector<160x32xf32>
    %cst_14 = arith.constant dense<0.000000e+00> : vector<39x32xf32>
    %39 = tpu.matmul %37, %38, %cst_14 {dimension_numbers = #tpu.dot_dimension_numbers<[1], [0], [0], [1], [0, 0, 1, 1], [], []>} : vector<39x160xf32>, vector<160x32xf32>, vector<39x32xf32> -> vector<39x32xf32>
    %c776 = arith.constant 776 : index
    %c0_15 = arith.constant 0 : index
    %40 = vector.load %arg2[%c776, %c0_15] : memref<800x32xf32, #tpu.memory_space<vmem>>, vector<1x32xf32>
    %41 = vector.broadcast %40 : vector<1x32xf32> to vector<39x32xf32>
    %42 = arith.addf %39, %41 : vector<39x32xf32>
    %cst_16 = arith.constant 0.000000e+00 : f32
    %43 = vector.broadcast %cst_16 : f32 to vector<39x32xf32>
    %44 = arith.maximumf %42, %43 : vector<39x32xf32>
    %45 = vector.extract_strided_slice %44 {offsets = [0, 0], sizes = [35, 32], strides = [1, 1]} : vector<39x32xf32> to vector<35x32xf32>
    %46 = vector.extract_strided_slice %44 {offsets = [1, 0], sizes = [35, 32], strides = [1, 1]} : vector<39x32xf32> to vector<35x32xf32>
    %47 = vector.extract_strided_slice %44 {offsets = [2, 0], sizes = [35, 32], strides = [1, 1]} : vector<39x32xf32> to vector<35x32xf32>
    %48 = vector.extract_strided_slice %44 {offsets = [3, 0], sizes = [35, 32], strides = [1, 1]} : vector<39x32xf32> to vector<35x32xf32>
    %49 = vector.extract_strided_slice %44 {offsets = [4, 0], sizes = [35, 32], strides = [1, 1]} : vector<39x32xf32> to vector<35x32xf32>
    %50 = tpu.concatenate %45, %46, %47, %48, %49 in 1 : vector<35x32xf32>, vector<35x32xf32>, vector<35x32xf32>, vector<35x32xf32>, vector<35x32xf32> -> vector<35x160xf32>
    %c496 = arith.constant 496 : index
    %c0_17 = arith.constant 0 : index
    %51 = vector.load %arg2[%c496, %c0_17] : memref<800x32xf32, #tpu.memory_space<vmem>>, vector<160x32xf32>
    %cst_18 = arith.constant dense<0.000000e+00> : vector<35x32xf32>
    %52 = tpu.matmul %50, %51, %cst_18 {dimension_numbers = #tpu.dot_dimension_numbers<[1], [0], [0], [1], [0, 0, 1, 1], [], []>} : vector<35x160xf32>, vector<160x32xf32>, vector<35x32xf32> -> vector<35x32xf32>
    %c784 = arith.constant 784 : index
    %c0_19 = arith.constant 0 : index
    %53 = vector.load %arg2[%c784, %c0_19] : memref<800x32xf32, #tpu.memory_space<vmem>>, vector<1x32xf32>
    %54 = vector.broadcast %53 : vector<1x32xf32> to vector<35x32xf32>
    %55 = arith.addf %52, %54 : vector<35x32xf32>
    %cst_20 = arith.constant 0.000000e+00 : f32
    %56 = vector.broadcast %cst_20 : f32 to vector<35x32xf32>
    %57 = arith.maximumf %55, %56 : vector<35x32xf32>
    %58 = vector.extract_strided_slice %57 {offsets = [0, 0], sizes = [1, 32], strides = [1, 1]} : vector<35x32xf32> to vector<1x32xf32>
    %59 = vector.extract_strided_slice %57 {offsets = [1, 0], sizes = [1, 32], strides = [1, 1]} : vector<35x32xf32> to vector<1x32xf32>
    %60 = vector.extract_strided_slice %57 {offsets = [2, 0], sizes = [1, 32], strides = [1, 1]} : vector<35x32xf32> to vector<1x32xf32>
    %61 = tpu.concatenate %58, %59, %60 in 1 : vector<1x32xf32>, vector<1x32xf32>, vector<1x32xf32> -> vector<1x96xf32>
    %62 = vector.extract_strided_slice %57 {offsets = [32, 0], sizes = [1, 32], strides = [1, 1]} : vector<35x32xf32> to vector<1x32xf32>
    %63 = vector.extract_strided_slice %57 {offsets = [33, 0], sizes = [1, 32], strides = [1, 1]} : vector<35x32xf32> to vector<1x32xf32>
    %64 = vector.extract_strided_slice %57 {offsets = [34, 0], sizes = [1, 32], strides = [1, 1]} : vector<35x32xf32> to vector<1x32xf32>
    %65 = tpu.concatenate %62, %63, %64 in 1 : vector<1x32xf32>, vector<1x32xf32>, vector<1x32xf32> -> vector<1x96xf32>
    %66 = tpu.concatenate %61, %65 in 0 : vector<1x96xf32>, vector<1x96xf32> -> vector<2x96xf32>
    %c656 = arith.constant 656 : index
    %c0_21 = arith.constant 0 : index
    %67 = vector.load %arg2[%c656, %c0_21] : memref<800x32xf32, #tpu.memory_space<vmem>>, vector<96x32xf32>
    %cst_22 = arith.constant dense<0.000000e+00> : vector<2x32xf32>
    %68 = tpu.matmul %66, %67, %cst_22 {dimension_numbers = #tpu.dot_dimension_numbers<[1], [0], [0], [1], [0, 0, 1, 1], [], []>} : vector<2x96xf32>, vector<96x32xf32>, vector<2x32xf32> -> vector<2x32xf32>
    %c792 = arith.constant 792 : index
    %c0_23 = arith.constant 0 : index
    %69 = vector.load %arg2[%c792, %c0_23] : memref<800x32xf32, #tpu.memory_space<vmem>>, vector<1x32xf32>
    %70 = vector.broadcast %69 : vector<1x32xf32> to vector<2x32xf32>
    %71 = arith.addf %68, %70 : vector<2x32xf32>
    %72 = vector.extract_strided_slice %71 {offsets = [0, 0], sizes = [2, 8], strides = [1, 1]} : vector<2x32xf32> to vector<2x8xf32>
    %c0_24 = arith.constant 0 : index
    %c0_25 = arith.constant 0 : index
    %73 = vector.load %arg3[%c0_24, %c0_25] : memref<2x8xf32, #tpu.memory_space<vmem>>, vector<2x8xf32>
    tpu.vector_store %arg3[%c0_24, %c0_25], %72 {strides = array<i32>} : memref<2x8xf32, #tpu.memory_space<vmem>>, vector<2x8xf32>,
    return
  }
  func.func @transform_0(%arg0: i32) -> (i32, i32) {
    %c0_i32 = arith.constant 0 : i32
    %c0_i32_0 = arith.constant 0 : i32
    %c0_i32_1 = arith.constant 0 : i32
    return %c0_i32, %c0_i32_0 : i32, i32
  }
  func.func @transform_1(%arg0: i32) -> (i32, i32) {
    %c0_i32 = arith.constant 0 : i32
    %c0_i32_0 = arith.constant 0 : i32
    %c0_i32_1 = arith.constant 0 : i32
    return %c0_i32, %c0_i32_0 : i32, i32
  }
  func.func @transform_2(%arg0: i32) -> (i32, i32) {
    %c0_i32 = arith.constant 0 : i32
    %c0_i32_0 = arith.constant 0 : i32
    %c0_i32_1 = arith.constant 0 : i32
    return %c0_i32, %c0_i32_0 : i32, i32
  }
}

</mosaic_0001>

<bundles_post_ra>
// kernel: proprio_adapt_tconv.1
= control target key start
LH: loop header
LB: loop body
LE: loop exit
PB: predicated region body
PF: predicated region fallthrough
CT: control target
= control target key end

     0   :  { %vm27_vm0 = vcmask 130048   ;;  %s2650_s0 = inlined_call_operand.vmem [shape: f32[64,16], index: 0, kind: input, shape index: {}]   ;;  %s2651_s1 = inlined_call_operand.vmem [shape: f32[800,32], index: 1, kind: input, shape index: {}]   ;;  %s2652_s2 = inlined_call_operand.hbm [shape: f32[2,8], index: 2, kind: output, shape index: {}]  }
   0x1   :  { %v20_v0 = vld [vmem:[%s2651_s1] sm:$0xff]  ;;  %v21_v1 = vld [vmem:[%s2651_s1 + $0x8] sm:$0xff]  ;;  %v165_v4 = vld [vmem:[%s2651_s1 + $0x10] sm:$0xff] }
   0x2   :  { %v12_v2 = vld [vmem:[%s2650_s0] sm:$0xff]  ;;  %v1591_v3 = vpack.c.bf16 %v21_v1, %v20_v0  ;;  %v166_v5 = vld [vmem:[%s2651_s1 + $0x18] sm:$0xff]  ;;  %v13_v6 = vld [vmem:[%s2650_s0 + $0x8] sm:$0xff] }
   0x3   :  { %1515 = vmatprep.mubr.msk.f32.mxu0 %vm27_vm0, %v12_v2  ;;  %v1595_v7 = vpack.c.bf16 %v166_v5, %v165_v4 }
   0x4   :  { %1592 = vmatprep.subr.bf16.mxu0 %v1591_v3 }
   0x5   :  { %1594 = vmatpush3.bf16.msra.mxu0 %v1591_v3 }
   0x6   :  { %7 = vsyncpa [#allocation3], 0  ;;  %v14_v8 = vld [vmem:[%s2650_s0 + $0x10] sm:$0xff]  ;;  %1596 = vmatprep.subr.bf16.mxu1 %v1595_v7  ;;  %v15_v9 = vld [vmem:[%s2650_s0 + $0x18] sm:$0xff]  ;;  %vm174_vm1 = vcmask 261120   ;;  %vm318_vm2 = vcmask 1046528  }
   0x7   :  { %1598 = vmatpush3.bf16.msra.mxu1 %v1595_v7  ;;  %v16_v10 = vld [vmem:[%s2650_s0 + $0x20] sm:$0xff]  ;;  %v17_v11 = vld [vmem:[%s2650_s0 + $0x28] sm:$0xff]  ;;  %v18_v12 = vld [vmem:[%s2650_s0 + $0x30] sm:$0xff]  ;;  %vm378_vm3 = vcmask 1044480   ;;  %vm348_vm4 = vcmask 1045504   ;;  %s1892_s26 = smov 32  }
   0x8   :  { %1516 = vmatmul.mubr.msk.f32.vlgmr.msra.gmra.mrb[0].mxu0 %vm27_vm0, %v13_v6  ;;  %v19_v13 = vld [vmem:[%s2650_s0 + $0x38] sm:$0xff]  ;;  %v167_v14 = vld [vmem:[%s2651_s1 + $0x20] sm:$0xff]  ;;  %v168_v15 = vld [vmem:[%s2651_s1 + $0x28] sm:$0xff]  ;;  %s1893_s27 = smov 96   ;;  %s1894_s28 = smov 64   ;;  %vm408_vm5 = vcmask 1043456  }
   0x9   :  { %1518 = vmatprep.mubr.msk.f32.mxu0 %vm27_vm0, %v14_v8  ;;  %v1599_v16 = vpack.c.bf16 %v168_v15, %v167_v14  ;;  %v1377_v17 = vld [vmem:[%s2651_s1 + $0x2f0] ss:$0 sm:$0xff]  ;;  %v565_v43 = vld [vmem:[%s2651_s1 + $0x138] sm:$0xff]  ;;  %v566_v45 = vld [vmem:[%s2651_s1 + $0x140] sm:$0xff]  ;;  %vm500_vm6 = vcmask 523264   ;;  %vm507_vm7 = vcmask 785408  }
   0xa   :  { %v564_v42 = vld [vmem:[%s2651_s1 + $0x130] sm:$0xff]  ;;  %v567_v46 = vld [vmem:[%s2651_s1 + $0x148] sm:$0xff]  ;;  %v549_v49 = vld [vmem:[%s2651_s1 + $0xb8] sm:$0xff]  ;;  %vm1896_vm8 = vmmov 0   ;;  %vm1269_vm9 = vcmask 1040384   ;;  %vm1361_vm10 = vcmask 58368  }
   0xb   :  { %1600 = vmatprep.subr.bf16.mxu1 %v1599_v16  ;;  %v1635_v44 = vpack.c.bf16 %v565_v43, %v564_v42  ;;  %v1639_v47 = vpack.c.bf16 %v567_v46, %v566_v45  ;;  %v548_v48 = vld [vmem:[%s2651_s1 + $0xb0] sm:$0xff]  ;;  %v533_v52 = vld [vmem:[%s2651_s1 + $0x38] sm:$0xff]  ;;  %v550_v53 = vld [vmem:[%s2651_s1 + $0xc0] sm:$0xff] }
   0xc   :  { %1519 = vmatmul.mubr.msk.f32.gmra.mrb[2].mxu0 %vm27_vm0, %v15_v9  ;;  %1602 = vmatpush3.bf16.msra.mxu1 %v1599_v16  ;;  %v532_v50 = vld [vmem:[%s2651_s1 + $0x30] sm:$0xff]  ;;  %v1603_v51 = vpack.c.bf16 %v549_v49, %v548_v48  ;;  %v551_v54 = vld [vmem:[%s2651_s1 + $0xc8] sm:$0xff]  ;;  %v534_v57 = vld [vmem:[%s2651_s1 + $0x40] sm:$0xff] }
   0xd   :  { %1521 = vmatprep.mubr.msk.f32.mxu0 %vm27_vm0, %v16_v10  ;;  %1636 = vmatprep.subr.bf16.mxu1 %v1635_v44  ;;  %v1605_v55 = vpack.c.bf16 %v533_v52, %v532_v50  ;;  %v1607_v56 = vpack.c.bf16 %v551_v54, %v550_v53  ;;  %v535_v58 = vld [vmem:[%s2651_s1 + $0x48] sm:$0xff]  ;;  %v552_v59 = vld [vmem:[%s2651_s1 + $0xd0] sm:$0xff]  ;;  %v553_v60 = vld [vmem:[%s2651_s1 + $0xd8] sm:$0xff] }
   0xe   :  { %1604 = vmatprep.subr.bf16.mxu0 %v1603_v51  ;;  %v1609_v61 = vpack.c.bf16 %v535_v58, %v534_v57  ;;  %v1611_v62 = vpack.c.bf16 %v553_v60, %v552_v59  ;;  %v536_v63 = vld [vmem:[%s2651_s1 + $0x50] sm:$0xff]  ;;  %v537_v0 = vld [vmem:[%s2651_s1 + $0x58] sm:$0xff]  ;;  %v554_v1 = vld [vmem:[%s2651_s1 + $0xe0] sm:$0xff] }
   0xf   :  { %1606 = vmatpush3.bf16.msra.mxu0 %v1605_v55  ;;  %v555_v2 = vld [vmem:[%s2651_s1 + $0xe8] sm:$0xff]  ;;  %v1613_v3 = vpack.c.bf16 %v537_v0, %v536_v63  ;;  %v538_v5 = vld [vmem:[%s2651_s1 + $0x60] sm:$0xff]  ;;  %v556_v7 = vld [vmem:[%s2651_s1 + $0xf0] sm:$0xff] }
  0x10   :  { %1522 = vmatmul.mubr.msk.f32.gmra.mrb[4].mxu0 %vm27_vm0, %v17_v11  ;;  %1608 = vmatprep.subr.bf16.mxu0 %v1607_v56  ;;  %v1615_v4 = vpack.c.bf16 %v555_v2, %v554_v1  ;;  %v539_v6 = vld [vmem:[%s2651_s1 + $0x68] sm:$0xff]  ;;  %v557_v8 = vld [vmem:[%s2651_s1 + $0xf8] sm:$0xff]  ;;  %v540_v11 = vld [vmem:[%s2651_s1 + $0x70] sm:$0xff] }
  0x11   :  { %1524 = vmatprep.mubr.msk.f32.mxu0 %vm27_vm0, %v18_v12  ;;  %v1617_v9 = vpack.c.bf16 %v539_v6, %v538_v5  ;;  %v1619_v10 = vpack.c.bf16 %v557_v8, %v556_v7  ;;  %v541_v12 = vld [vmem:[%s2651_s1 + $0x78] sm:$0xff]  ;;  %v559_v14 = vld [vmem:[%s2651_s1 + $0x108] sm:$0xff]  ;;  %v546_v42 = vld [vmem:[%s2651_s1 + $0xa0] sm:$0xff] }
  0x12   :  { %v1621_v15 = vpack.c.bf16 %v541_v12, %v540_v11  ;;  %v547_v43 = vld [vmem:[%s2651_s1 + $0xa8] sm:$0xff] }
  0x13   :  { %1610 = vmatpush3.bf16.msra.mxu0 %v1609_v61 }
  0x14   :  { %1525 = vmatmul.mubr.msk.f32.gmra.mrb[6].mxu0 %vm27_vm0, %v19_v13  ;;  %1612 = vmatprep.subr.bf16.mxu0 %v1611_v62  ;;  %v558_v13 = vld [vmem:[%s2651_s1 + $0x100] sm:$0xff] }
  0x15   :  { %v1623_v16 = vpack.c.bf16 %v559_v14, %v558_v13 }
  0x17   :  { %1614 = vmatpush3.bf16.msra.mxu0 %v1613_v3 }
  0x18   :  { %1616 = vmatprep.subr.bf16.mxu0 %v1615_v4 }
  0x1b   :  { %1618 = vmatpush3.bf16.msra.mxu0 %v1617_v9 }
  0x1c   :  { %1620 = vmatprep.subr.bf16.mxu0 %v1619_v10 }
  0x1f   :  { %1622 = vmatpush3.bf16.msra.mxu0 %v1621_v15 }
  0x20   :  { %1624 = vmatprep.subr.bf16.mxu0 %v1623_v16 }
  0xdb   :  { %v1517_v18 = vpop.f32.mrb[0].mxu0 }
  0xdc   :  { %v124_v19 = vadd.f32 %v1517_v18, %v1377_v17  ;;  %v118_v20 = vpop.f32.mrb[1].mxu0  ;;  %v543_v18 = vld [vmem:[%s2651_s1 + $0x88] sm:$0xff] }
  0xdd   :  { %v119_v21 = vadd.f32 %v1377_v17, %v118_v20  ;;  %v2062_v20 = vld [vmem:[%s2651_s1 + $0x2f8] ss:$0 sm:$0xff] }
  0xde   :  { %v158_v24 = vmax.f32 %v124_v19, 0.0 }
  0xdf   :  { %v157_v22 = vmax.f32 %v119_v21, 0.0  ;;  %v1520_v23 = vpop.f32.mrb[2].mxu0 }
  0xe0   :  { %v134_v25 = vadd.f32 %v1520_v23, %v1377_v17  ;;  %v128_v26 = vpop.f32.mrb[3].mxu0 }
  0xe1   :  { %v129_v27 = vadd.f32 %v1377_v17, %v128_v26  ;;  %1535 = vmatprep.mubr.msk.f32.mxu1 %vm174_vm1, %v157_v22  ;;  %v544_v26 = vld [vmem:[%s2651_s1 + $0x90] sm:$0xff] }
  0xe2   :  { %1536 = vmatmul.mubr.msk.f32.vlgmr.msra.gmra.mrb[0].mxu1 %vm174_vm1, %v158_v24  ;;  %v160_v30 = vmax.f32 %v134_v25, 0.0  ;;  %v560_v24 = vld [vmem:[%s2651_s1 + $0x110] sm:$0xff]  ;;  %v561_v25 = vld [vmem:[%s2651_s1 + $0x118] sm:$0xff] }
  0xe3   :  { %v159_v28 = vmax.f32 %v129_v27, 0.0  ;;  %v1523_v29 = vpop.f32.mrb[4].mxu0  ;;  %1638 = vmatpush3.bf16.msra.mxu1 %v1635_v44 }
  0xe4   :  { %v144_v31 = vadd.f32 %v1523_v29, %v1377_v17  ;;  %v138_v32 = vpop.f32.mrb[5].mxu0  ;;  %1640 = vmatprep.subr.bf16.mxu1 %v1639_v47  ;;  %v545_v29 = vld [vmem:[%s2651_s1 + $0x98] sm:$0xff] }
  0xe5   :  { %v139_v33 = vadd.f32 %v1377_v17, %v138_v32  ;;  %1538 = vmatprep.mubr.msk.f32.mxu1 %vm174_vm1, %v159_v28  ;;  %v1627_v28 = vpack.c.bf16 %v561_v25, %v560_v24 }
  0xe6   :  { %v162_v34 = vmax.f32 %v144_v31, 0.0  ;;  %1539 = vmatmul.mubr.msk.f32.gmra.mrb[2].mxu1 %vm174_vm1, %v160_v30  ;;  %v1629_v31 = vpack.c.bf16 %v545_v29, %v544_v26 }
  0xe7   :  { %v161_v35 = vmax.f32 %v139_v33, 0.0  ;;  %v1526_v36 = vpop.f32.mrb[6].mxu0  ;;  %1642 = vmatpush3.bf16.msra.mxu1 %v1639_v47  ;;  %v1633_v47 = vpack.c.bf16 %v547_v43, %v546_v42 }
  0xe8   :  { %v154_v37 = vadd.f32 %v1526_v36, %v1377_v17  ;;  %v148_v38 = vpop.f32.mrb[7].mxu0 }
  0xe9   :  { %v149_v39 = vadd.f32 %v1377_v17, %v148_v38  ;;  %1541 = vmatprep.mubr.msk.f32.mxu1 %vm174_vm1, %v161_v35  ;;  %v542_v17 = vld [vmem:[%s2651_s1 + $0x80] sm:$0xff]  ;;  %v563_v38 = vld [vmem:[%s2651_s1 + $0x128] sm:$0xff] }
  0xea   :  { %v164_v40 = vmax.f32 %v154_v37, 0.0  ;;  %1542 = vmatmul.mubr.msk.f32.gmra.mrb[4].mxu1 %vm174_vm1, %v162_v34  ;;  %v1625_v19 = vpack.c.bf16 %v543_v18, %v542_v17  ;;  %v562_v37 = vld [vmem:[%s2651_s1 + $0x120] sm:$0xff] }
  0xeb   :  { %v163_v41 = vmax.f32 %v149_v39, 0.0  ;;  %v1631_v46 = vpack.c.bf16 %v563_v38, %v562_v37 }
  0xec   :  { %1626 = vmatpush3.bf16.msra.mxu0 %v1625_v19 }
  0xed   :  { %1544 = vmatprep.mubr.msk.f32.mxu1 %vm174_vm1, %v163_v41  ;;  %1628 = vmatprep.subr.bf16.mxu0 %v1627_v28 }
  0xee   :  { %1545 = vmatmul.mubr.msk.f32.gmra.mrb[6].mxu1 %vm174_vm1, %v164_v40 }
  0xf0   :  { %1630 = vmatpush3.bf16.msra.mxu0 %v1629_v31 }
  0xf1   :  { %1632 = vmatprep.subr.bf16.mxu0 %v1631_v46 }
  0xf4   :  { %1634 = vmatpush3.bf16.msra.mxu0 %v1633_v47 }
 0x1b5   :  { %v1537_v21 = vpop.f32.mrb[0].mxu1 }
 0x1b6   :  { %v271_v22 = vadd.f32 %v1537_v21, %v2062_v20  ;;  %v265_v23 = vpop.f32.mrb[1].mxu1 }
 0x1b7   :  { %v266_v27 = vadd.f32 %v2062_v20, %v265_v23 }
 0x1b8   :  { %v2078_v30 = vmax.f32 %v271_v22, 0.0 }
 0x1b9   :  { %v2080_v32 = vmax.f32 %v266_v27, 0.0  ;;  %v1540_v33 = vpop.f32.mrb[2].mxu1 }
 0x1ba   :  { %v281_v34 = vadd.f32 %v1540_v33, %v2062_v20  ;;  %v275_v35 = vpop.f32.mrb[3].mxu1  ;;  %v320_v36 = vrot.slane %v2078_v30, 1  ;;  %v380_v41 = vrot.slane %v2078_v30, 3  ;;  %v350_v45 = vrot.slane %v2078_v30, 2 }
 0x1bb   :  { %v276_v39 = vadd.f32 %v2062_v20, %v275_v35  ;;  %v319_v40 = vrot.slane %v2080_v32, 1  ;;  %v379_v51 = vrot.slane %v2080_v32, 3  ;;  %v349_v52 = vrot.slane %v2080_v32, 2 }
 0x1bc   :  { %v2099_v44 = vmax.f32 %v281_v34, 0.0 }
 0x1bd   :  { %v2102_v48 = vmax.f32 %v276_v39, 0.0  ;;  %v1543_v49 = vpop.f32.mrb[4].mxu1  ;;  %v321_v50 = vsel %vm318_vm2, %v319_v40, %v320_v36  ;;  %v381_v4 = vsel %vm378_vm3, %v379_v51, %v380_v41  ;;  %v351_v9 = vsel %vm348_vm4, %v349_v52, %v350_v45 }
 0x1be   :  { %v291_v53 = vadd.f32 %v1543_v49, %v2062_v20  ;;  %v285_v54 = vpop.f32.mrb[5].mxu1  ;;  %v384_v55 = vrot.slane %v2099_v44, 3  ;;  %v354_v56 = vrot.slane %v2099_v44, 2  ;;  %v324_v57 = vrot.slane %v2099_v44, 1 }
 0x1bf   :  { %v286_v58 = vadd.f32 %v2062_v20, %v285_v54  ;;  %v1728_v59 = vpack.i.bf16 %v321_v50, %v2102_v48  ;;  %v382_v60 = vrot.slane %v2102_v48, 3  ;;  %v352_v61 = vrot.slane %v2102_v48, 2 }
 0x1c0   :  { %v2115_v62 = vmax.f32 %v291_v53, 0.0  ;;  %v322_v63 = vrot.slane %v2102_v48, 1 }
 0x1c1   :  { %v2118_v0 = vmax.f32 %v286_v58, 0.0  ;;  %v1546_v1 = vpop.f32.mrb[6].mxu1  ;;  %1729 = vrot.lane.b32.xlu0 %v1728_v59, %s1892_s26  ;;  %v385_v2 = vsel %vm378_vm3, %v382_v60, %v384_v55  ;;  %v355_v3 = vsel %vm348_vm4, %v352_v61, %v354_v56  ;;  %v353_v39 = vsel %vm348_vm4, %v350_v45, %v352_v61 }
 0x1c2   :  { %v301_v5 = vadd.f32 %v1546_v1, %v2062_v20  ;;  %v295_v6 = vpop.f32.mrb[7].mxu1  ;;  %1555 = vmatprep.mubr.msk.f32.mxu1 %vm174_vm1, %v385_v2  ;;  %v1738_v7 = vpack.i.bf16 %v381_v4, %v355_v3  ;;  %v325_v8 = vsel %vm318_vm2, %v322_v63, %v324_v57  ;;  %v388_v15 = vrot.slane %v2115_v62, 3 }
 0x1c3   :  { %v296_v10 = vadd.f32 %v2062_v20, %v295_v6  ;;  %v1733_v11 = vpack.i.bf16 %v351_v9, %v325_v8  ;;  %v386_v12 = vrot.slane %v2118_v0, 3  ;;  %v326_v14 = vrot.slane %v2118_v0, 1 }
 0x1c4   :  { %v2134_v13 = vmax.f32 %v301_v5, 0.0  ;;  %1739 = vrot.lane.b32.xlu1 %v1738_v7, %s1893_s27  ;;  %v323_v16 = vsel %vm318_vm2, %v320_v36, %v322_v63  ;;  %v328_v18 = vrot.slane %v2115_v62, 1  ;;  %v1748_v23 = vpack.i.bf16 %v325_v8, %v2118_v0 }
 0x1c5   :  { %v310_v17 = vmax.f32 %v296_v10, 0.0  ;;  %1734 = vrot.lane.b32.xlu0 %v1733_v11, %s1894_s28  ;;  %v387_v19 = vsel %vm378_vm3, %v384_v55, %v386_v12  ;;  %v389_v21 = vsel %vm378_vm3, %v386_v12, %v388_v15  ;;  %v1743_v22 = vpack.i.bf16 %v323_v16, %v2099_v44 }
 0x1c6   :  { %v448_v20 = vrot.slane %v2134_v13, 1  ;;  %1556 = vmatmul.mubr.msk.f32.vlgmr.msra.gmra.mrb[8].mxu1 %vm174_vm1, %v387_v19  ;;  %v470_v24 = vrot.slane %v2134_v13, 2  ;;  %v356_v27 = vrot.slane %v2118_v0, 2  ;;  %v492_v29 = vrot.slane %v2134_v13, 3 }
 0x1c7   :  { %v446_v25 = vrot.slane %v310_v17, 1  ;;  %1558 = vmatprep.mubr.msk.f32.mxu1 %vm174_vm1, %v389_v21  ;;  %v490_v26 = vrot.slane %v310_v17, 3  ;;  %v468_v28 = vrot.slane %v310_v17, 2  ;;  %v327_v31 = vsel %vm318_vm2, %v324_v57, %v326_v14 }
 0x1c8   :  { %1744 = vrot.lane.b32.xlu1 %v1743_v22, %s1892_s26  ;;  %v358_v33 = vrot.slane %v2115_v62, 2  ;;  %v357_v35 = vsel %vm348_vm4, %v354_v56, %v356_v27  ;;  %v383_v36 = vsel %vm378_vm3, %v380_v41, %v382_v60  ;;  %v329_v40 = vsel %vm318_vm2, %v326_v14, %v328_v18 }
 0x1c9   :  { %1749 = vrot.lane.b32.xlu0 %v1748_v23, %s1892_s26  ;;  %v491_v34 = vsel %vm378_vm3, %v388_v15, %v490_v26  ;;  %v1758_v37 = vpack.i.bf16 %v383_v36, %v357_v35  ;;  %v493_v38 = vsel %vm378_vm3, %v490_v26, %v492_v29  ;;  %v1753_v42 = vpack.i.bf16 %v353_v39, %v327_v31 }
 0x1ca   :  { %1559 = vmatmul.mubr.msk.f32.gmra.mrb[10].mxu1 %vm174_vm1, %v491_v34  ;;  %v359_v43 = vsel %vm348_vm4, %v356_v27, %v358_v33  ;;  %v449_v41 = vsel %vm318_vm2, %v446_v25, %v448_v20  ;;  %v471_v46 = vsel %vm348_vm4, %v468_v28, %v470_v24  ;;  %v1763_v47 = vpack.i.bf16 %v355_v3, %v329_v40 }
 0x1cb   :  { %1561 = vmatprep.mubr.msk.f32.mxu1 %vm174_vm1, %v493_v38  ;;  %v1768_v49 = vpack.i.bf16 %v385_v2, %v359_v43  ;;  %v447_v45 = vsel %vm318_vm2, %v328_v18, %v446_v25  ;;  %v1773_v50 = vpack.i.bf16 %v327_v31, %v2115_v62  ;;  %v469_v52 = vsel %vm348_vm4, %v358_v33, %v468_v28 }
 0x1cc   :  { %1759 = vrot.lane.b32.xlu1 %v1758_v37, %s1893_s27  ;;  %v1778_v51 = vpack.i.bf16 %v357_v35, %v447_v45  ;;  %v1788_v53 = vpack.i.bf16 %v387_v19, %v469_v52  ;;  %v1783_v54 = vpack.i.bf16 %v329_v40, %v310_v17  ;;  %v1793_v55 = vpack.i.bf16 %v359_v43, %v449_v41 }
 0x1cd   :  { %1754 = vrot.lane.b32.xlu0 %v1753_v42, %s1894_s28  ;;  %v1803_v56 = vpack.i.bf16 %v389_v21, %v471_v46  ;;  %v1798_v57 = vpack.i.bf16 %v328_v18, %v2134_v13  ;;  %v1808_v58 = vpack.i.bf16 %v358_v33, %v448_v20  ;;  %v1813_v59 = vpack.i.bf16 %v388_v15, %v470_v24 }
 0x1ce   :  { %1562 = vmatmul.mubr.msk.f32.gmra.mrb[12].mxu1 %vm174_vm1, %v492_v29  ;;  %v409_v61 = vrot.slane %v2080_v32, 4  ;;  %v410_v63 = vrot.slane %v2078_v30, 4  ;;  %v412_v18 = vrot.slane %v2102_v48, 4  ;;  %v414_v21 = vrot.slane %v2099_v44, 4 }
 0x1cf   :  { %v416_v38 = vrot.slane %v2118_v0, 4 }
 0x1d0   :  { %1764 = vrot.lane.b32.xlu1 %v1763_v47, %s1894_s28  ;;  %v411_v7 = vsel %vm408_vm5, %v409_v61, %v410_v63  ;;  %v413_v23 = vsel %vm408_vm5, %v410_v63, %v412_v18  ;;  %v415_v37 = vsel %vm408_vm5, %v412_v18, %v414_v21 }
 0x1d1   :  { %1769 = vrot.lane.b32.xlu0 %v1768_v49, %s1893_s27 }
 0x1d4   :  { %1774 = vrot.lane.b32.xlu1 %v1773_v50, %s1892_s26 }
 0x1d5   :  { %1779 = vrot.lane.b32.xlu0 %v1778_v51, %s1894_s28 }
 0x1d8   :  { %1789 = vrot.lane.b32.xlu1 %v1788_v53, %s1893_s27 }
 0x1d9   :  { %1784 = vrot.lane.b32.xlu0 %v1783_v54, %s1892_s26 }
 0x1dc   :  { %1794 = vrot.lane.b32.xlu1 %v1793_v55, %s1894_s28 }
 0x1dd   :  { %1804 = vrot.lane.b32.xlu0 %v1803_v56, %s1893_s27 }
 0x1e0   :  { %1799 = vrot.lane.b32.xlu1 %v1798_v57, %s1892_s26 }
 0x1e1   :  { %1809 = vrot.lane.b32.xlu0 %v1808_v58, %s1894_s28 }
 0x1e4   :  { %1814 = vrot.lane.b32.xlu1 %v1813_v59, %s1893_s27  ;;  %v417_v59 = vsel %vm408_vm5, %v414_v21, %v416_v38 }
 0x233   :  { %v1730_v60 = vpop.permute.xlu0 %1729 }
 0x234   :  { %v1732_v1 = vunpack.i.h.bf16 %v1730_v60  ;;  %v1731_v2 = vunpack.i.l.bf16 %v1730_v60 }
 0x236   :  { %v1740_v3 = vpop.permute.xlu1 %1739  ;;  %v494_v8 = vsel %vm174_vm1, %v2080_v32, %v1732_v1  ;;  %v514_v11 = vsel %vm174_vm1, %v411_v7, %v1731_v2 }
 0x237   :  { %v1735_v4 = vpop.permute.xlu0 %1734  ;;  %v1742_v9 = vunpack.i.h.bf16 %v1740_v3  ;;  %v1741_v10 = vunpack.i.l.bf16 %v1740_v3  ;;  %v418_v3 = vrot.slane %v2115_v62, 4 }
 0x238   :  { %v1737_v5 = vunpack.i.h.bf16 %v1735_v4  ;;  %v1736_v6 = vunpack.i.l.bf16 %v1735_v4 }
 0x23a   :  { %v501_v12 = vsel %vm500_vm6, %v494_v8, %v1737_v5  ;;  %v1745_v13 = vpop.permute.xlu1 %1744  ;;  %v520_v14 = vsel %vm500_vm6, %v514_v11, %v1736_v6 }
 0x23b   :  { %v1750_v15 = vpop.permute.xlu0 %1749  ;;  %v526_v16 = vsel %vm507_vm7, %v520_v14, %v1741_v10  ;;  %v508_v17 = vsel %vm507_vm7, %v501_v12, %v1742_v9  ;;  %v1747_v19 = vunpack.i.h.bf16 %v1745_v13  ;;  %v1746_v20 = vunpack.i.l.bf16 %v1745_v13 }
 0x23c   :  { %649 = vmatprep.mubr.f32.mxu0 %v526_v16  ;;  %v1752_v24 = vunpack.i.h.bf16 %v1750_v15  ;;  %v1751_v25 = vunpack.i.l.bf16 %v1750_v15  ;;  %v419_v13 = vsel %vm408_vm5, %v416_v38, %v418_v3 }
 0x23d   :  { %650 = vmatmul.mubr.f32.vlgmr.msra.gmra.mrb[8].mxu0 %v508_v17  ;;  %v515_v31 = vsel %vm174_vm1, %v413_v23, %v1746_v20  ;;  %v495_v33 = vsel %vm174_vm1, %v2078_v30, %v1747_v19 }
 0x23e   :  { %v1760_v32 = vpop.permute.xlu1 %1759  ;;  %v516_v30 = vsel %vm174_vm1, %v415_v37, %v1751_v25  ;;  %v496_v49 = vsel %vm174_vm1, %v2102_v48, %v1752_v24 }
 0x23f   :  { %v1755_v22 = vpop.permute.xlu0 %1754  ;;  %v1762_v28 = vunpack.i.h.bf16 %v1760_v32  ;;  %v1761_v29 = vunpack.i.l.bf16 %v1760_v32 }
 0x240   :  { %v1757_v26 = vunpack.i.h.bf16 %v1755_v22  ;;  %v1756_v27 = vunpack.i.l.bf16 %v1755_v22 }
 0x242   :  { %v1765_v34 = vpop.permute.xlu1 %1764  ;;  %v521_v35 = vsel %vm500_vm6, %v515_v31, %v1756_v27  ;;  %v502_v36 = vsel %vm500_vm6, %v495_v33, %v1757_v26 }
 0x243   :  { %v1767_v39 = vunpack.i.h.bf16 %v1765_v34  ;;  %v1766_v40 = vunpack.i.l.bf16 %v1765_v34  ;;  %v1770_v42 = vpop.permute.xlu0 %1769  ;;  %v527_v43 = vsel %vm507_vm7, %v521_v35, %v1761_v29  ;;  %v509_v41 = vsel %vm507_vm7, %v502_v36, %v1762_v28 }
 0x244   :  { %v1772_v46 = vunpack.i.h.bf16 %v1770_v42  ;;  %v1771_v47 = vunpack.i.l.bf16 %v1770_v42  ;;  %654 = vmatprep.mubr.f32.mxu0 %v527_v43  ;;  %v889_v43 = vld [vmem:[%s2651_s1 + $0x150] sm:$0xff] }
 0x245   :  { %655 = vmatmul.mubr.f32.gmra.mrb[10].mxu0 %v509_v41  ;;  %v522_v45 = vsel %vm500_vm6, %v516_v30, %v1766_v40  ;;  %v503_v50 = vsel %vm500_vm6, %v496_v49, %v1767_v39  ;;  %v890_v41 = vld [vmem:[%s2651_s1 + $0x158] sm:$0xff]  ;;  %v892_v49 = vld [vmem:[%s2651_s1 + $0x168] sm:$0xff] }
 0x246   :  { %v1775_v51 = vpop.permute.xlu1 %1774  ;;  %v528_v52 = vsel %vm507_vm7, %v522_v45, %v1771_v47  ;;  %v510_v58 = vsel %vm507_vm7, %v503_v50, %v1772_v46  ;;  %v891_v46 = vld [vmem:[%s2651_s1 + $0x160] sm:$0xff]  ;;  %v1895_v47 = vmov 0.0|0.0   ;;  %v1644_v30 = vpack.c.bf16 %v890_v41, %v889_v43  ;;  %v893_v50 = vld [vmem:[%s2651_s1 + $0x170] sm:$0xff] }
 0x247   :  { %v1777_v53 = vunpack.i.h.bf16 %v1775_v51  ;;  %v1776_v54 = vunpack.i.l.bf16 %v1775_v51  ;;  %v1780_v55 = vpop.permute.xlu0 %1779  ;;  %659 = vmatprep.mubr.f32.mxu0 %v528_v52  ;;  %1643 = vmatprep.subr.bf16.mxu1 %v1895_v47  ;;  %v1647_v45 = vpack.c.bf16 %v892_v49, %v891_v46  ;;  %v894_v51 = vld [vmem:[%s2651_s1 + $0x178] sm:$0xff] }
 0x248   :  { %v1782_v56 = vunpack.i.h.bf16 %v1780_v55  ;;  %v1781_v57 = vunpack.i.l.bf16 %v1780_v55  ;;  %1673 = vmatprep.subr.bf16.mxu0 %v1895_v47  ;;  %1645 = vmatpush1.bf16.msra.mxu1 %v1644_v30  ;;  %v1650_v52 = vpack.c.bf16 %v894_v51, %v893_v50 }
 0x249   :  { %660 = vmatmul.mubr.f32.gmra.mrb[12].mxu0 %v510_v58  ;;  %v517_v48 = vsel %vm174_vm1, %v417_v59, %v1776_v54  ;;  %v497_v60 = vsel %vm174_vm1, %v2099_v44, %v1777_v53  ;;  %1646 = vmatprep.subr.bf16.mxu1 %v1895_v47  ;;  %v895_v53 = vld [vmem:[%s2651_s1 + $0x180] sm:$0xff]  ;;  %v896_v54 = vld [vmem:[%s2651_s1 + $0x188] sm:$0xff] }
 0x24a   :  { %v1790_v61 = vpop.permute.xlu1 %1789  ;;  %v523_v6 = vsel %vm500_vm6, %v517_v48, %v1781_v57  ;;  %v504_v7 = vsel %vm500_vm6, %v497_v60, %v1782_v56  ;;  %v1653_v55 = vpack.c.bf16 %v896_v54, %v895_v53  ;;  %v897_v56 = vld [vmem:[%s2651_s1 + $0x190] sm:$0xff]  ;;  %v898_v57 = vld [vmem:[%s2651_s1 + $0x198] sm:$0xff]  ;;  %v899_v59 = vld [vmem:[%s2651_s1 + $0x1a0] sm:$0xff] }
 0x24b   :  { %v1792_v63 = vunpack.i.h.bf16 %v1790_v61  ;;  %v1791_v1 = vunpack.i.l.bf16 %v1790_v61  ;;  %v1785_v2 = vpop.permute.xlu0 %1784  ;;  %v1656_v58 = vpack.c.bf16 %v898_v57, %v897_v56  ;;  %v900_v48 = vld [vmem:[%s2651_s1 + $0x1a8] sm:$0xff]  ;;  %v901_v61 = vld [vmem:[%s2651_s1 + $0x1b0] sm:$0xff] }
 0x24c   :  { %v1787_v4 = vunpack.i.h.bf16 %v1785_v2  ;;  %v1786_v5 = vunpack.i.l.bf16 %v1785_v2  ;;  %1648 = vmatpush1.bf16.msra.mxu1 %v1647_v45  ;;  %v1659_v60 = vpack.c.bf16 %v900_v48, %v899_v59  ;;  %v903_v2 = vld [vmem:[%s2651_s1 + $0x1c0] sm:$0xff] }
 0x24d   :  { %v529_v8 = vsel %vm507_vm7, %v523_v6, %v1791_v1  ;;  %v511_v9 = vsel %vm507_vm7, %v504_v7, %v1792_v63  ;;  %1649 = vmatprep.subr.bf16.mxu1 %v1895_v47  ;;  %v902_v63 = vld [vmem:[%s2651_s1 + $0x1b8] sm:$0xff]  ;;  %v2311_v6 = vld [vmem:[%s2651_s1 + $0x300] ss:$0 sm:$0xff] }
 0x24e   :  { %v1795_v10 = vpop.permute.xlu1 %1794  ;;  %664 = vmatprep.mubr.f32.mxu0 %v529_v8  ;;  %v518_v16 = vsel %vm174_vm1, %v419_v13, %v1786_v5  ;;  %v498_v17 = vsel %vm174_vm1, %v2118_v0, %v1787_v4  ;;  %v1662_v1 = vpack.c.bf16 %v902_v63, %v901_v61 }
 0x24f   :  { %v1797_v11 = vunpack.i.h.bf16 %v1795_v10  ;;  %v1796_v44 = vunpack.i.l.bf16 %v1795_v10  ;;  %v1805_v12 = vpop.permute.xlu0 %1804  ;;  %665 = vmatmul.mubr.f32.gmra.mrb[14].mxu0 %v511_v9 }
 0x250   :  { %v1807_v14 = vunpack.i.h.bf16 %v1805_v12  ;;  %v1806_v15 = vunpack.i.l.bf16 %v1805_v12  ;;  %1651 = vmatpush1.bf16.msra.mxu1 %v1650_v52 }
 0x251   :  { %v524_v18 = vsel %vm500_vm6, %v518_v16, %v1796_v44  ;;  %v505_v19 = vsel %vm500_vm6, %v498_v17, %v1797_v11  ;;  %1652 = vmatprep.subr.bf16.mxu1 %v1895_v47 }
 0x252   :  { %v1800_v20 = vpop.permute.xlu1 %1799  ;;  %v530_v32 = vsel %vm507_vm7, %v524_v18, %v1806_v15  ;;  %v512_v21 = vsel %vm507_vm7, %v505_v19, %v1807_v14 }
 0x253   :  { %v1802_v22 = vunpack.i.h.bf16 %v1800_v20  ;;  %v1801_v23 = vunpack.i.l.bf16 %v1800_v20  ;;  %v1810_v24 = vpop.permute.xlu0 %1809  ;;  %669 = vmatprep.mubr.f32.mxu0 %v530_v32  ;;  %v905_v32 = vld [vmem:[%s2651_s1 + $0x1d0] sm:$0xff] }
 0x254   :  { %v1812_v25 = vunpack.i.h.bf16 %v1810_v24  ;;  %v1811_v26 = vunpack.i.l.bf16 %v1810_v24  ;;  %670 = vmatmul.mubr.f32.gmra.mrb[16].mxu0 %v512_v21  ;;  %1654 = vmatpush1.bf16.msra.mxu1 %v1653_v55  ;;  %v906_v21 = vld [vmem:[%s2651_s1 + $0x1d8] sm:$0xff] }
 0x255   :  { %v519_v27 = vsel %vm174_vm1, %v418_v3, %v1801_v23  ;;  %v499_v0 = vsel %vm174_vm1, %v2115_v62, %v1802_v22  ;;  %1655 = vmatprep.subr.bf16.mxu1 %v1895_v47  ;;  %v904_v3 = vld [vmem:[%s2651_s1 + $0x1c8] sm:$0xff]  ;;  %v1668_v22 = vpack.c.bf16 %v906_v21, %v905_v32 }
 0x256   :  { %v1815_v28 = vpop.permute.xlu1 %1814  ;;  %v525_v33 = vsel %vm500_vm6, %v519_v27, %v1811_v26  ;;  %v506_v34 = vsel %vm500_vm6, %v499_v0, %v1812_v25  ;;  %v1665_v4 = vpack.c.bf16 %v904_v3, %v903_v2  ;;  %v907_v27 = vld [vmem:[%s2651_s1 + $0x1e0] sm:$0xff]  ;;  %v908_v0 = vld [vmem:[%s2651_s1 + $0x1e8] sm:$0xff] }
 0x257   :  { %v1817_v29 = vunpack.i.h.bf16 %v1815_v28  ;;  %v1816_v31 = vunpack.i.l.bf16 %v1815_v28 }
 0x258   :  { %1657 = vmatpush1.bf16.msra.mxu1 %v1656_v58 }
 0x259   :  { %v531_v35 = vsel %vm507_vm7, %v525_v33, %v1816_v31  ;;  %v513_v36 = vsel %vm507_vm7, %v506_v34, %v1817_v29  ;;  %1658 = vmatprep.subr.bf16.mxu1 %v1895_v47  ;;  %v1671_v31 = vpack.c.bf16 %v908_v0, %v907_v27 }
 0x25a   :  { %674 = vmatprep.mubr.f32.mxu0 %v531_v35 }
 0x25b   :  { %675 = vmatmul.mubr.f32.gmra.mrb[18].mxu0 %v513_v36 }
 0x25c   :  { %1660 = vmatpush1.bf16.msra.mxu1 %v1659_v60 }
 0x25d   :  { %1661 = vmatprep.subr.bf16.mxu1 %v1895_v47 }
 0x260   :  { %1663 = vmatpush1.bf16.msra.mxu1 %v1662_v1 }
 0x261   :  { %1664 = vmatprep.subr.bf16.mxu1 %v1895_v47 }
 0x264   :  { %1666 = vmatpush1.bf16.msra.mxu1 %v1665_v4 }
 0x265   :  { %1667 = vmatprep.subr.bf16.mxu1 %v1895_v47 }
 0x268   :  { %1669 = vmatpush1.bf16.msra.mxu1 %v1668_v22 }
 0x269   :  { %1670 = vmatprep.subr.bf16.mxu1 %v1895_v47 }
 0x26c   :  { %1672 = vmatpush1.bf16.msra.mxu1 %v1671_v31 }
 0x26d   :  { %1703 = vmatprep.subr.bf16.mxu1 %v1895_v47 }
 0x299   :  { %v1557_v37 = vpop.f32.mrb[8].mxu1 }
 0x29a   :  { %v746_v38 = vpop.f32.mrb[9].mxu1 }
 0x29d   :  { %v2242_v39 = vpop.f32.mrb[10].mxu1 }
 0x29e   :  { %v2244_v40 = vpop.f32.mrb[11].mxu1 }
 0x2a1   :  { %v2246_v62 = vpop.f32.mrb[12].mxu1 }
 0x2a2   :  { %v2248_v42 = vpop.f32.mrb[13].mxu1 }
 0x310   :  { %v1470_v5 = vpop.f32.mrb[8].mxu0 }
 0x311   :  { %v1471_v7 = vpop.f32.mrb[9].mxu0 }
 0x312   :  { %v1472_v8 = vadd.f32 %v1471_v7, %v1470_v5 }
 0x314   :  { %v652_v9 = vadd.f32 %v1472_v8, %v2311_v6 }
 0x316   :  { %v747_v10 = vadd.f32 %v746_v38, %v652_v9 }
 0x318   :  { %v1473_v11 = vpop.f32.mrb[10].mxu0  ;;  %v2315_v16 = vmax.f32 %v747_v10, 0.0 }
 0x319   :  { %v1474_v44 = vpop.f32.mrb[11].mxu0 }
 0x31a   :  { %v1475_v12 = vadd.f32 %v1474_v44, %v1473_v11  ;;  %v863_v25 = vrot.slane %v2315_v16, 4  ;;  %v786_v38 = vrot.slane %v2315_v16, 1  ;;  %v837_v58 = vrot.slane %v2315_v16, 3 }
 0x31c   :  { %v657_v13 = vadd.f32 %v1475_v12, %v2311_v6  ;;  %v1476_v14 = vpop.f32.mrb[12].mxu0 }
 0x31d   :  { %v1477_v15 = vpop.f32.mrb[13].mxu0 }
 0x31e   :  { %v752_v17 = vadd.f32 %v1557_v37, %v657_v13  ;;  %v1478_v18 = vadd.f32 %v1477_v15, %v1476_v14  ;;  %v811_v37 = vrot.slane %v2315_v16, 2 }
 0x320   :  { %v2317_v19 = vmax.f32 %v752_v17, 0.0  ;;  %v662_v20 = vadd.f32 %v1478_v18, %v2311_v6 }
 0x322   :  { %v757_v23 = vadd.f32 %v2244_v40, %v662_v20  ;;  %v1479_v24 = vpop.f32.mrb[14].mxu0  ;;  %v864_v26 = vrot.slane %v2317_v19, 4  ;;  %v812_v29 = vrot.slane %v2317_v19, 2  ;;  %v787_v36 = vrot.slane %v2317_v19, 1 }
 0x323   :  { %v1480_v28 = vpop.f32.mrb[15].mxu0  ;;  %v838_v45 = vrot.slane %v2317_v19, 3 }
 0x324   :  { %v2336_v33 = vmax.f32 %v757_v23, 0.0  ;;  %v1481_v34 = vadd.f32 %v1480_v28, %v1479_v24  ;;  %v865_v35 = vsel %vm408_vm5, %v863_v25, %v864_v26  ;;  %v813_v49 = vsel %vm348_vm4, %v811_v37, %v812_v29 }
 0x325   :  { %1403 = vmatprep.mubr.msk.f32.mxu1 %vm174_vm1, %v865_v35  ;;  %v788_v53 = vsel %vm318_vm2, %v786_v38, %v787_v36  ;;  %v839_v60 = vsel %vm378_vm3, %v837_v58, %v838_v45 }
 0x326   :  { %v667_v40 = vadd.f32 %v1481_v34, %v2311_v6  ;;  %v814_v43 = vrot.slane %v2336_v33, 2  ;;  %v789_v41 = vrot.slane %v2336_v33, 1  ;;  %v840_v46 = vrot.slane %v2336_v33, 3 }
 0x327   :  { %v1482_v30 = vpop.f32.mrb[16].mxu0  ;;  %v866_v34 = vrot.slane %v2336_v33, 4 }
 0x328   :  { %v762_v50 = vadd.f32 %v2242_v39, %v667_v40  ;;  %v1483_v51 = vpop.f32.mrb[17].mxu0  ;;  %v815_v52 = vsel %vm348_vm4, %v812_v29, %v814_v43  ;;  %v790_v54 = vsel %vm318_vm2, %v787_v36, %v789_v41  ;;  %v841_v59 = vsel %vm378_vm3, %v838_v45, %v840_v46 }
 0x329   :  { %v1484_v55 = vadd.f32 %v1483_v51, %v1482_v30  ;;  %v1823_v56 = vpack.i.bf16 %v815_v52, %v813_v49  ;;  %v1818_v57 = vpack.i.bf16 %v790_v54, %v788_v53  ;;  %v1828_v63 = vpack.i.bf16 %v841_v59, %v839_v60 }
 0x32a   :  { %v2359_v48 = vmax.f32 %v762_v50, 0.0 }
 0x32b   :  { %v672_v39 = vadd.f32 %v1484_v55, %v2311_v6  ;;  %1824 = vrot.lane.b32.xlu1 %v1823_v56, %s1894_s28  ;;  %1819 = vrot.lane.b32.xlu0 %v1818_v57, %s1892_s26 }
 0x32c   :  { %v791_v4 = vrot.slane %v2359_v48, 1  ;;  %v816_v5 = vrot.slane %v2359_v48, 2  ;;  %v842_v17 = vrot.slane %v2359_v48, 3 }
 0x32d   :  { %v767_v61 = vadd.f32 %v2248_v42, %v672_v39 }
 0x32e   :  { %v1485_v1 = vpop.f32.mrb[18].mxu0  ;;  %v792_v42 = vsel %vm318_vm2, %v789_v41, %v791_v4  ;;  %v817_v44 = vsel %vm348_vm4, %v814_v43, %v816_v5  ;;  %v867_v41 = vsel %vm408_vm5, %v864_v26, %v866_v34 }
 0x32f   :  { %v2366_v2 = vmax.f32 %v767_v61, 0.0  ;;  %v1486_v3 = vpop.f32.mrb[19].mxu0  ;;  %1829 = vrot.lane.b32.xlu0 %v1828_v63, %s1893_s27 }
 0x330   :  { %v1487_v7 = vadd.f32 %v1486_v3, %v1485_v1 }
 0x331   :  { %v793_v8 = vrot.slane %v2366_v2, 1  ;;  %v818_v9 = vrot.slane %v2366_v2, 2  ;;  %v844_v18 = vrot.slane %v2366_v2, 3 }
 0x332   :  { %v677_v10 = vadd.f32 %v1487_v7, %v2311_v6  ;;  %v843_v6 = vsel %vm378_vm3, %v840_v46, %v842_v17 }
 0x333   :  { %v794_v11 = vsel %vm318_vm2, %v791_v4, %v793_v8  ;;  %v819_v12 = vsel %vm348_vm4, %v816_v5, %v818_v9  ;;  %v845_v32 = vsel %vm378_vm3, %v842_v17, %v844_v18 }
 0x334   :  { %v772_v13 = vadd.f32 %v2246_v62, %v677_v10  ;;  %v1833_v14 = vpack.i.bf16 %v794_v11, %v792_v42  ;;  %v1838_v15 = vpack.i.bf16 %v819_v12, %v817_v44  ;;  %v1123_v42 = vld [vmem:[%s2651_s1 + $0x208] sm:$0xff]  ;;  %v1124_v44 = vld [vmem:[%s2651_s1 + $0x210] sm:$0xff]  ;;  %v1125_v12 = vld [vmem:[%s2651_s1 + $0x218] sm:$0xff] }
 0x336   :  { %v780_v20 = vmax.f32 %v772_v13, 0.0  ;;  %1834 = vrot.lane.b32.xlu1 %v1833_v14, %s1892_s26  ;;  %1839 = vrot.lane.b32.xlu0 %v1838_v15, %s1894_s28  ;;  %v1680_v13 = vpack.c.bf16 %v1125_v12, %v1124_v44  ;;  %v1126_v14 = vld [vmem:[%s2651_s1 + $0x220] sm:$0xff]  ;;  %v1127_v15 = vld [vmem:[%s2651_s1 + $0x228] sm:$0xff] }
 0x337   :  { %v1683_v17 = vpack.c.bf16 %v1127_v15, %v1126_v14 }
 0x338   :  { %v820_v21 = vrot.slane %v780_v20, 2  ;;  %v846_v22 = vrot.slane %v780_v20, 3  ;;  %v872_v61 = vrot.slane %v780_v20, 4  ;;  %v1129_v20 = vld [vmem:[%s2651_s1 + $0x238] sm:$0xff] }
 0x33a   :  { %852 = vrot.lane.b32.xlu1 %v843_v6, %s1893_s27  ;;  %854 = vrot.lane.b32.xlu0 %v845_v32, %s1893_s27  ;;  %v821_v62 = vsel %vm348_vm4, %v818_v9, %v820_v21  ;;  %v847_v23 = vsel %vm378_vm3, %v844_v18, %v846_v22  ;;  %v1122_v9 = vld [vmem:[%s2651_s1 + $0x200] sm:$0xff]  ;;  %v1128_v18 = vld [vmem:[%s2651_s1 + $0x230] sm:$0xff] }
 0x33b   :  { %v1677_v11 = vpack.c.bf16 %v1123_v42, %v1122_v9  ;;  %v1686_v6 = vpack.c.bf16 %v1129_v20, %v1128_v18  ;;  %v1130_v32 = vld [vmem:[%s2651_s1 + $0x240] sm:$0xff]  ;;  %v1131_v21 = vld [vmem:[%s2651_s1 + $0x248] sm:$0xff]  ;;  %v1132_v22 = vld [vmem:[%s2651_s1 + $0x250] sm:$0xff] }
 0x33e   :  { %803 = vrot.lane.b32.xlu1 %v793_v8, %s1892_s26  ;;  %830 = vrot.lane.b32.xlu0 %v821_v62, %s1894_s28  ;;  %v1120_v8 = vld [vmem:[%s2651_s1 + $0x1f0] sm:$0xff]  ;;  %v1689_v62 = vpack.c.bf16 %v1131_v21, %v1130_v32 }
 0x342   :  { %856 = vrot.lane.b32.xlu1 %v847_v23, %s1893_s27  ;;  %v1133_v23 = vld [vmem:[%s2651_s1 + $0x258] sm:$0xff] }
 0x39d   :  { %v1825_v24 = vpop.permute.xlu1 %1824  ;;  %v1820_v25 = vpop.permute.xlu0 %1819 }
 0x39e   :  { %v1821_v27 = vunpack.i.l.bf16 %v1820_v25  ;;  %v1826_v0 = vunpack.i.l.bf16 %v1825_v24  ;;  %v1822_v28 = vunpack.i.h.bf16 %v1820_v25  ;;  %v1827_v36 = vunpack.i.h.bf16 %v1825_v24  ;;  %v1134_v25 = vld [vmem:[%s2651_s1 + $0x260] sm:$0xff] }
 0x39f   :  { %v1692_v24 = vpack.c.bf16 %v1133_v23, %v1132_v22 }
 0x3a0   :  { %v874_v29 = vsel %vm174_vm1, %v2315_v16, %v1821_v27  ;;  %v875_v43 = vsel %vm174_vm1, %v2317_v19, %v1822_v28  ;;  %v868_v16 = vrot.slane %v2359_v48, 4  ;;  %v870_v19 = vrot.slane %v2366_v2, 4  ;;  %v1135_v27 = vld [vmem:[%s2651_s1 + $0x268] sm:$0xff] }
 0x3a1   :  { %v1830_v31 = vpop.permute.xlu0 %1829  ;;  %v879_v37 = vsel %vm500_vm6, %v874_v29, %v1826_v0  ;;  %v880_v46 = vsel %vm500_vm6, %v875_v43, %v1827_v36  ;;  %v1695_v0 = vpack.c.bf16 %v1135_v27, %v1134_v25  ;;  %v1402_v28 = vld [vmem:[%s2651_s1 + $0x308] ss:$0 sm:$0xff]  ;;  %v1136_v43 = vld [vmem:[%s2651_s1 + $0x270] sm:$0xff] }
 0x3a2   :  { %v1831_v35 = vunpack.i.l.bf16 %v1830_v31  ;;  %v1832_v38 = vunpack.i.h.bf16 %v1830_v31  ;;  %v869_v53 = vsel %vm408_vm5, %v866_v34, %v868_v16  ;;  %v871_v39 = vsel %vm408_vm5, %v868_v16, %v870_v19 }
 0x3a3   :  { %v873_v3 = vsel %vm408_vm5, %v870_v19, %v872_v61 }
 0x3a4   :  { %v884_v40 = vsel %vm507_vm7, %v879_v37, %v1831_v35  ;;  %v885_v45 = vsel %vm507_vm7, %v880_v46, %v1832_v38 }
 0x3a5   :  { %989 = vmatmul.mubr.f32.vlgmr.msra.gmra.mrb[14].mxu1 %v884_v40 }
 0x3a6   :  { %1404 = vmatprep.mubr.msk.f32.mxu1 %vm174_vm1, %v867_v41  ;;  %v1137_v41 = vld [vmem:[%s2651_s1 + $0x278] sm:$0xff] }
 0x3a8   :  { %v1835_v30 = vpop.permute.xlu1 %1834  ;;  %v1840_v49 = vpop.permute.xlu0 %1839 }
 0x3a9   :  { %v1837_v50 = vunpack.i.h.bf16 %v1835_v30  ;;  %v1836_v51 = vunpack.i.l.bf16 %v1835_v30  ;;  %v1841_v52 = vunpack.i.l.bf16 %v1840_v49  ;;  %994 = vmatmul.mubr.f32.gmra.mrb[16].mxu1 %v885_v45  ;;  %v1842_v54 = vunpack.i.h.bf16 %v1840_v49 }
 0x3aa   :  { %1405 = vmatprep.mubr.msk.f32.mxu1 %vm174_vm1, %v869_v53 }
 0x3ab   :  { %v876_v26 = vsel %vm174_vm1, %v2336_v33, %v1836_v51  ;;  %v877_v55 = vsel %vm174_vm1, %v2359_v48, %v1837_v50  ;;  %v1698_v50 = vpack.c.bf16 %v1137_v41, %v1136_v43  ;;  %v1138_v51 = vld [vmem:[%s2651_s1 + $0x280] sm:$0xff] }
 0x3ac   :  { %v853_v56 = vpop.permute.xlu1 %852  ;;  %v855_v57 = vpop.permute.xlu0 %854  ;;  %v881_v58 = vsel %vm500_vm6, %v876_v26, %v1841_v52  ;;  %v882_v60 = vsel %vm500_vm6, %v877_v55, %v1842_v54  ;;  %v1139_v52 = vld [vmem:[%s2651_s1 + $0x288] sm:$0xff] }
 0x3ad   :  { %v886_v59 = vsel %vm507_vm7, %v881_v58, %v853_v56  ;;  %v887_v48 = vsel %vm507_vm7, %v882_v60, %v855_v57  ;;  %v1701_v55 = vpack.c.bf16 %v1139_v52, %v1138_v51 }
 0x3ae   :  { %999 = vmatmul.mubr.f32.gmra.mrb[18].mxu1 %v886_v59 }
 0x3af   :  { %1406 = vmatprep.mubr.msk.f32.mxu1 %vm174_vm1, %v871_v39 }
 0x3b0   :  { %v804_v63 = vpop.permute.xlu1 %803  ;;  %v831_v1 = vpop.permute.xlu0 %830 }
 0x3b1   :  { %v878_v33 = vsel %vm174_vm1, %v2366_v2, %v804_v63  ;;  %v1121_v2 = vld [vmem:[%s2651_s1 + $0x1f8] sm:$0xff] }
 0x3b2   :  { %1004 = vmatmul.mubr.f32.gmra.mrb[20].mxu1 %v887_v48  ;;  %v883_v4 = vsel %vm500_vm6, %v878_v33, %v831_v1  ;;  %v1674_v10 = vpack.c.bf16 %v1121_v2, %v1120_v8 }
 0x3b3   :  { %1407 = vmatprep.mubr.msk.f32.mxu1 %vm174_vm1, %v873_v3 }
 0x3b4   :  { %v857_v5 = vpop.permute.xlu1 %856  ;;  %1675 = vmatpush1.bf16.msra.mxu0 %v1674_v10 }
 0x3b5   :  { %v888_v7 = vsel %vm507_vm7, %v883_v4, %v857_v5  ;;  %1676 = vmatprep.subr.bf16.mxu0 %v1895_v47 }
 0x3b6   :  { %1009 = vmatmul.mubr.f32.gmra.mrb[22].mxu1 %v888_v7 }
 0x3b8   :  { %1678 = vmatpush1.bf16.msra.mxu0 %v1677_v11 }
 0x3b9   :  { %1679 = vmatprep.subr.bf16.mxu0 %v1895_v47 }
 0x3bc   :  { %1681 = vmatpush1.bf16.msra.mxu0 %v1680_v13 }
 0x3bd   :  { %1682 = vmatprep.subr.bf16.mxu0 %v1895_v47 }
 0x3c0   :  { %1684 = vmatpush1.bf16.msra.mxu0 %v1683_v17 }
 0x3c1   :  { %1685 = vmatprep.subr.bf16.mxu0 %v1895_v47 }
 0x3c4   :  { %1687 = vmatpush1.bf16.msra.mxu0 %v1686_v6 }
 0x3c5   :  { %1688 = vmatprep.subr.bf16.mxu0 %v1895_v47 }
 0x3c8   :  { %1690 = vmatpush1.bf16.msra.mxu0 %v1689_v62 }
 0x3c9   :  { %1691 = vmatprep.subr.bf16.mxu0 %v1895_v47 }
 0x3cc   :  { %1693 = vmatpush1.bf16.msra.mxu0 %v1692_v24 }
 0x3cd   :  { %1694 = vmatprep.subr.bf16.mxu0 %v1895_v47 }
 0x3d0   :  { %1696 = vmatpush1.bf16.msra.mxu0 %v1695_v0 }
 0x3d1   :  { %1697 = vmatprep.subr.bf16.mxu0 %v1895_v47 }
 0x3d4   :  { %1699 = vmatpush1.bf16.msra.mxu0 %v1698_v50 }
 0x3d5   :  { %1700 = vmatprep.subr.bf16.mxu0 %v1895_v47 }
 0x3d8   :  { %1702 = vmatpush1.bf16.msra.mxu0 %v1701_v55 }
 0x478   :  { %v990_v29 = vpop.f32.mrb[14].mxu1 }
 0x479   :  { %v991_v31 = vadd.f32 %v1402_v28, %v990_v29  ;;  %v992_v34 = vpop.f32.mrb[15].mxu1 }
 0x47b   :  { %v2484_v36 = vmax.f32 %v991_v31, 0.0 }
 0x47c   :  { %v995_v35 = vpop.f32.mrb[16].mxu1 }
 0x47d   :  { %v996_v37 = vadd.f32 %v1402_v28, %v995_v35  ;;  %v997_v38 = vpop.f32.mrb[17].mxu1  ;;  %v1096_v46 = vrot.slane %v2484_v36, 4  ;;  %v1048_v57 = vrot.slane %v2484_v36, 2  ;;  %v1024_v58 = vrot.slane %v2484_v36, 1 }
 0x47e   :  { %v1072_v42 = vrot.slane %v2484_v36, 3 }
 0x47f   :  { %v2486_v40 = vmax.f32 %v996_v37, 0.0 }
 0x481   :  { %v1000_v16 = vpop.f32.mrb[18].mxu1  ;;  %v1097_v30 = vrot.slane %v2486_v40, 4  ;;  %v1049_v54 = vrot.slane %v2486_v40, 2  ;;  %v1025_v26 = vrot.slane %v2486_v40, 1  ;;  %v1073_v1 = vrot.slane %v2486_v40, 3 }
 0x482   :  { %v1001_v49 = vadd.f32 %v1402_v28, %v1000_v16  ;;  %v1002_v45 = vpop.f32.mrb[19].mxu1 }
 0x483   :  { %v1098_v53 = vsel %vm408_vm5, %v1096_v46, %v1097_v30  ;;  %v1050_v33 = vsel %vm348_vm4, %v1048_v57, %v1049_v54  ;;  %v1026_v4 = vsel %vm318_vm2, %v1024_v58, %v1025_v26  ;;  %v1074_v12 = vsel %vm378_vm3, %v1072_v42, %v1073_v1 }
 0x484   :  { %v2506_v19 = vmax.f32 %v1001_v49, 0.0  ;;  %1409 = vmatprep.mubr.msk.f32.mxu0 %vm174_vm1, %v1098_v53 }
 0x485   :  { %v1005_v56 = vpop.f32.mrb[20].mxu1 }
 0x486   :  { %v1006_v59 = vadd.f32 %v1402_v28, %v1005_v56  ;;  %v1007_v39 = vpop.f32.mrb[21].mxu1  ;;  %v1051_v60 = vrot.slane %v2506_v19, 2  ;;  %v1027_v61 = vrot.slane %v2506_v19, 1  ;;  %v1075_v63 = vrot.slane %v2506_v19, 3 }
 0x487   :  { %v1099_v38 = vrot.slane %v2506_v19, 4 }
 0x488   :  { %v2518_v48 = vmax.f32 %v1006_v59, 0.0  ;;  %v1052_v3 = vsel %vm348_vm4, %v1049_v54, %v1051_v60  ;;  %v1028_v5 = vsel %vm318_vm2, %v1025_v26, %v1027_v61  ;;  %v1076_v11 = vsel %vm378_vm3, %v1073_v1, %v1075_v63 }
 0x489   :  { %v1010_v7 = vpop.f32.mrb[22].mxu1  ;;  %v1848_v8 = vpack.i.bf16 %v1052_v3, %v1050_v33  ;;  %v1843_v2 = vpack.i.bf16 %v1028_v5, %v1026_v4  ;;  %v1853_v15 = vpack.i.bf16 %v1076_v11, %v1074_v12  ;;  %v1274_v11 = vld [vmem:[%s2651_s1 + $0x2a8] sm:$0xff]  ;;  %v1275_v12 = vld [vmem:[%s2651_s1 + $0x2b0] sm:$0xff] }
 0x48a   :  { %v1011_v9 = vadd.f32 %v1402_v28, %v1010_v7  ;;  %v1012_v10 = vpop.f32.mrb[23].mxu1  ;;  %v1029_v13 = vrot.slane %v2518_v48, 1  ;;  %v1053_v14 = vrot.slane %v2518_v48, 2  ;;  %v1077_v23 = vrot.slane %v2518_v48, 3 }
 0x48b   :  { %1849 = vrot.lane.b32.xlu1 %v1848_v8, %s1894_s28  ;;  %1844 = vrot.lane.b32.xlu0 %v1843_v2, %s1892_s26  ;;  %v1101_v52 = vrot.slane %v2518_v48, 4  ;;  %v1271_v2 = vld [vmem:[%s2651_s1 + $0x290] sm:$0xff]  ;;  %v1273_v10 = vld [vmem:[%s2651_s1 + $0x2a0] sm:$0xff] }
 0x48c   :  { %v2527_v44 = vmax.f32 %v1011_v9, 0.0  ;;  %v1030_v20 = vsel %vm318_vm2, %v1027_v61, %v1029_v13  ;;  %v1054_v32 = vsel %vm348_vm4, %v1051_v60, %v1053_v14  ;;  %v1078_v25 = vsel %vm378_vm3, %v1075_v63, %v1077_v23  ;;  %v1272_v9 = vld [vmem:[%s2651_s1 + $0x298] sm:$0xff] }
 0x48d   :  { %v1704_v42 = vpack.c.bf16 %v1272_v9, %v1271_v2 }
 0x48e   :  { %v1031_v17 = vrot.slane %v2527_v44, 1  ;;  %v1055_v18 = vrot.slane %v2527_v44, 2  ;;  %v1079_v24 = vrot.slane %v2527_v44, 3  ;;  %v1103_v39 = vrot.slane %v2527_v44, 4 }
 0x48f   :  { %1854 = vrot.lane.b32.xlu0 %v1853_v15, %s1893_s27  ;;  %1705 = vmatpush3.bf16.msra.mxu1 %v1704_v42  ;;  %v1277_v15 = vld [vmem:[%s2651_s1 + $0x2c0] sm:$0xff] }
 0x490   :  { %v1032_v6 = vsel %vm318_vm2, %v1029_v13, %v1031_v17  ;;  %v1056_v21 = vsel %vm348_vm4, %v1053_v14, %v1055_v18  ;;  %v1080_v27 = vsel %vm378_vm3, %v1077_v23, %v1079_v24  ;;  %1706 = vmatprep.subr.bf16.mxu1 %v1895_v47  ;;  %v1276_v13 = vld [vmem:[%s2651_s1 + $0x2b8] sm:$0xff] }
 0x491   :  { %v1858_v62 = vpack.i.bf16 %v1032_v6, %v1030_v20  ;;  %v1863_v22 = vpack.i.bf16 %v1056_v21, %v1054_v32  ;;  %v1710_v14 = vpack.c.bf16 %v1276_v13, %v1275_v12 }
 0x493   :  { %1859 = vrot.lane.b32.xlu1 %v1858_v62, %s1892_s26  ;;  %1864 = vrot.lane.b32.xlu0 %v1863_v22, %s1894_s28 }
 0x497   :  { %1085 = vrot.lane.b32.xlu1 %v1078_v25, %s1893_s27  ;;  %1087 = vrot.lane.b32.xlu0 %v1080_v27, %s1893_s27  ;;  %v1280_v25 = vld [vmem:[%s2651_s1 + $0x2d8] sm:$0xff] }
 0x49b   :  { %1041 = vrot.lane.b32.xlu1 %v1031_v17, %s1892_s26  ;;  %1065 = vrot.lane.b32.xlu0 %v1055_v18, %s1894_s28  ;;  %v1278_v17 = vld [vmem:[%s2651_s1 + $0x2c8] sm:$0xff] }
 0x49c   :  { %v1713_v18 = vpack.c.bf16 %v1278_v17, %v1277_v15 }
 0x49f   :  { %1089 = vrot.lane.b32.xlu1 %v1079_v24, %s1893_s27  ;;  %v1279_v24 = vld [vmem:[%s2651_s1 + $0x2d0] sm:$0xff] }
 0x4fd   :  { %v1850_v0 = vpop.permute.xlu1 %1849  ;;  %v1845_v28 = vpop.permute.xlu0 %1844 }
 0x4fe   :  { %v1846_v29 = vunpack.i.l.bf16 %v1845_v28  ;;  %v1851_v31 = vunpack.i.l.bf16 %v1850_v0  ;;  %v1847_v34 = vunpack.i.h.bf16 %v1845_v28  ;;  %v1852_v41 = vunpack.i.h.bf16 %v1850_v0  ;;  %v1408_v28 = vld [vmem:[%s2651_s1 + $0x310] ss:$0 sm:$0xff] }
 0x4ff   :  { %v1716_v0 = vpack.c.bf16 %v1280_v25, %v1279_v24 }
 0x500   :  { %v1105_v35 = vsel %vm174_vm1, %v2484_v36, %v1846_v29  ;;  %v1106_v45 = vsel %vm174_vm1, %v2486_v40, %v1847_v34  ;;  %v1100_v36 = vsel %vm408_vm5, %v1097_v30, %v1099_v38  ;;  %v1102_v40 = vsel %vm408_vm5, %v1099_v38, %v1101_v52  ;;  %v1282_v34 = vld [vmem:[%s2651_s1 + $0x2e8] sm:$0xff] }
 0x501   :  { %v1855_v37 = vpop.permute.xlu0 %1854  ;;  %v1110_v16 = vsel %vm500_vm6, %v1105_v35, %v1851_v31  ;;  %v1111_v55 = vsel %vm500_vm6, %v1106_v45, %v1852_v41  ;;  %v1281_v31 = vld [vmem:[%s2651_s1 + $0x2e0] sm:$0xff]  ;;  %v1897_v41 = vmov 0.0  }
 0x502   :  { %v1856_v43 = vunpack.i.l.bf16 %v1855_v37  ;;  %v1857_v46 = vunpack.i.h.bf16 %v1855_v37  ;;  %1588 = vmatprep.mubr.msk.f32.mxu1 %vm1896_vm8, %v1897_v41 }
 0x504   :  { %v1115_v49 = vsel %vm507_vm7, %v1110_v16, %v1856_v43  ;;  %v1116_v56 = vsel %vm507_vm7, %v1111_v55, %v1857_v46  ;;  %v1719_v43 = vpack.c.bf16 %v1282_v34, %v1281_v31 }
 0x505   :  { %v1860_v50 = vpop.permute.xlu1 %1859  ;;  %v1865_v51 = vpop.permute.xlu0 %1864  ;;  %1220 = vmatmul.mubr.f32.vlgmr.msra.gmra.mrb[20].mxu0 %v1115_v49 }
 0x506   :  { %v1862_v53 = vunpack.i.h.bf16 %v1860_v50  ;;  %v1861_v54 = vunpack.i.l.bf16 %v1860_v50  ;;  %v1866_v26 = vunpack.i.l.bf16 %v1865_v51  ;;  %1410 = vmatprep.mubr.msk.f32.mxu0 %vm174_vm1, %v1100_v36  ;;  %v1867_v58 = vunpack.i.h.bf16 %v1865_v51 }
 0x508   :  { %v1107_v57 = vsel %vm174_vm1, %v2506_v19, %v1861_v54  ;;  %v1108_v61 = vsel %vm174_vm1, %v2518_v48, %v1862_v53  ;;  %v1104_v19 = vsel %vm408_vm5, %v1101_v52, %v1103_v39 }
 0x509   :  { %v1086_v59 = vpop.permute.xlu1 %1085  ;;  %1225 = vmatmul.mubr.f32.gmra.mrb[22].mxu0 %v1116_v56  ;;  %v1112_v30 = vsel %vm500_vm6, %v1107_v57, %v1866_v26  ;;  %v1088_v60 = vpop.permute.xlu0 %1087  ;;  %v1113_v1 = vsel %vm500_vm6, %v1108_v61, %v1867_v58 }
 0x50a   :  { %1411 = vmatprep.mubr.msk.f32.mxu0 %vm174_vm1, %v1102_v40  ;;  %v1117_v63 = vsel %vm507_vm7, %v1112_v30, %v1086_v59  ;;  %v1118_v5 = vsel %vm507_vm7, %v1113_v1, %v1088_v60  ;;  %v1414_v59 = vld [vmem:[%s2651_s1 + $0x318] ss:$0 sm:$0xff] }
 0x50d   :  { %v1042_v33 = vpop.permute.xlu1 %1041  ;;  %1229 = vmatmul.mubr.f32.gmra.mrb[24].mxu0 %v1117_v63  ;;  %v1066_v4 = vpop.permute.xlu0 %1065 }
 0x50e   :  { %1412 = vmatprep.mubr.msk.f32.mxu0 %vm174_vm1, %v1104_v19  ;;  %v1109_v3 = vsel %vm174_vm1, %v2527_v44, %v1042_v33  ;;  %v1707_v44 = vpack.c.bf16 %v1274_v11, %v1273_v10 }
 0x50f   :  { %v1114_v48 = vsel %vm500_vm6, %v1109_v3, %v1066_v4 }
 0x510   :  { %1708 = vmatpush3.bf16.msra.mxu1 %v1707_v44 }
 0x511   :  { %v1090_v7 = vpop.permute.xlu1 %1089  ;;  %1233 = vmatmul.mubr.f32.gmra.mrb[26].mxu0 %v1118_v5  ;;  %1709 = vmatprep.subr.bf16.mxu1 %v1895_v47 }
 0x512   :  { %1413 = vmatprep.mubr.msk.f32.mxu0 %vm174_vm1, %v1103_v39  ;;  %v1119_v8 = vsel %vm507_vm7, %v1114_v48, %v1090_v7 }
 0x514   :  { %1711 = vmatpush3.bf16.msra.mxu1 %v1710_v14 }
 0x515   :  { %1237 = vmatmul.mubr.f32.gmra.mrb[28].mxu0 %v1119_v8  ;;  %1712 = vmatprep.subr.bf16.mxu1 %v1895_v47 }
 0x518   :  { %1714 = vmatpush3.bf16.msra.mxu1 %v1713_v18 }
 0x519   :  { %1715 = vmatprep.subr.bf16.mxu1 %v1895_v47 }
 0x51c   :  { %1717 = vmatpush3.bf16.msra.mxu1 %v1716_v0 }
 0x51d   :  { %1718 = vmatprep.subr.bf16.mxu1 %v1895_v47 }
 0x520   :  { %1720 = vmatpush3.bf16.msra.mxu1 %v1719_v43 }
 0x5d8   :  { %v1221_v20 = vpop.f32.mrb[20].mxu0 }
 0x5d9   :  { %v1223_v6 = vpop.f32.mrb[21].mxu0  ;;  %v1222_v35 = vadd.f32 %v1408_v28, %v1221_v20 }
 0x5db   :  { %v1242_v46 = vmax.f32 %v1222_v35, 0.0 }
 0x5dc   :  { %v1226_v32 = vpop.f32.mrb[22].mxu0 }
 0x5dd   :  { %v1227_v21 = vpop.f32.mrb[23].mxu0  ;;  %v1249_v45 = vrot.slane %v1242_v46, 2  ;;  %v1245_v50 = vrot.slane %v1242_v46, 1 }
 0x5e0   :  { %v1230_v62 = vpop.f32.mrb[24].mxu0 }
 0x5e1   :  { %v1231_v22 = vpop.f32.mrb[25].mxu0 }
 0x5e4   :  { %v1234_v23 = vpop.f32.mrb[26].mxu0 }
 0x5e5   :  { %v1235_v27 = vpop.f32.mrb[27].mxu0 }
 0x5e8   :  { %v1238_v29 = vpop.f32.mrb[28].mxu0 }
 0x5e9   :  { %v1239_v37 = vadd.f32 %v1408_v28, %v1238_v29  ;;  %v1240_v38 = vpop.f32.mrb[29].mxu0 }
 0x5eb   :  { %v1243_v16 = vmax.f32 %v1239_v37, 0.0 }
 0x5ed   :  { %v1260_v49 = vrot.slane %v1243_v16, 2  ;;  %v1256_v47 = vrot.slane %v1243_v16, 1 }
 0x5ef   :  { %1261 = vrot.lane.b32.xlu1 %v1260_v49, %s1894_s28  ;;  %1257 = vrot.lane.b32.xlu0 %v1256_v47, %s1892_s26 }
 0x5f3   :  { %1250 = vrot.lane.b32.xlu1 %v1249_v45, %s1894_s28  ;;  %1246 = vrot.lane.b32.xlu0 %v1245_v50, %s1892_s26  ;;  %s1898_s26 = smov [#allocation2]  }
 0x5f4   :  { %s1369_s27 = sshll.u32 %s1898_s26, 4  ;;  %s1370_s27 = int_to_ptr.vmem [resolvable:$true] %s1369_s27 }
 0x5f5   :  { %s1868_s7 = scalar_lea.vmem %s1370_s27, 32  ;;  %p1873_p1 = scmp.lt.s32.totalorder %s1370_s27, %s1370_s27 }
 0x5f6   :  { %p1869_p0 = scmp.ne.s32.totalorder %s1370_s27, %s1868_s7  ;;  %p1874_p2 = scmp.lt.s32.totalorder %s1868_s7, %s1868_s7 }
 0x5f8   :  { %p1875_p3 = por %p1874_p2, %p1873_p1 }
 0x5fa   :  { %p1876_p4 = pnand %p1875_p3, %p1869_p0 }
 0x661   :  { %v1262_v51 = vpop.permute.xlu1 %1261  ;;  %v1258_v36 = vpop.permute.xlu0 %1257 }
 0x662   :  { %v1264_v52 = vsel %vm174_vm1, %v1243_v16, %v1258_v36 }
 0x663   :  { %v1265_v53 = vsel %vm500_vm6, %v1264_v52, %v1262_v51 }
 0x664   :  { %v1267_v55 = vrot.slane %v1265_v53, 7 }
 0x665   :  { %v1251_v54 = vpop.permute.xlu1 %1250  ;;  %v1247_v26 = vpop.permute.xlu0 %1246 }
 0x666   :  { %v1253_v56 = vsel %vm174_vm1, %v1242_v46, %v1247_v26 }
 0x667   :  { %v1254_v57 = vsel %vm500_vm6, %v1253_v56, %v1251_v54 }
 0x668   :  { %v1270_v58 = vsel %vm1269_vm9, %v1254_v57, %v1267_v55 }
 0x669   :  { %1589 = vmatmul.mubr.msk.f32.vlgmr.msra.gmra.mrb[24].mxu1 %vm507_vm7, %v1270_v58 }
 0x73c   :  { %v1357_v40 = vpop.f32.mrb[24].mxu1 }
 0x73d   :  { %v1358_v30 = vadd.f32 %v1414_v59, %v1357_v40  ;;  %v1590_v39 = vpop.f32.mrb[25].mxu1 }
 0x73f   :  { %1362 = vst.msk [vmem:[#allocation2] sm:$0x3] %vm1361_vm10, %v1358_v30 }
 0x740   :  { %1879 = shalt.err (!%p1876_p4)
}
 0x741   :  { %s1880_s10 = scalar_lea.hbm %s2652_s2, 32 }
 0x742   :  { %p1881_p5 = scmp.ne.s32.totalorder %s2652_s2, %s1880_s10  ;;  %p1884_p6 = scmp.lt.u32.totalorder %s1880_s10, %s2652_s2 }
 0x744   :  { %p1886_p7 = pnand %p1884_p6, %p1881_p5 }
 0x746   :  { %1889 = shalt.err (!%p1886_p7)
}
 0x747   :  { %1372 = dma.vmem_to_hbm [thread:$0]  %s1370_s27, 32, %s2652_s2, [#allocation3]  }
 0x748   :  { %1890 = dma.done.wait [#allocation3], 32  }
 0x749   :  { %1891 = vsyncadd [#allocation3], 4294967264 }
 0x74a   :  { %1376 = vsyncpa [#allocation3], 1 }

</bundles_post_ra>
